<compile_context>
chip_gen: v7x
topology: tpu7x:2x2x1
jax: 0.10.0
libtpu: 0.0.40
codegen_flags: <defaults>
</compile_context>

<pallas_src>
import jax
import jax.numpy as jnp
from jax.experimental import pallas as pl
from jax.experimental.pallas import tpu as pltpu


PACK = 8                       # logical rows per slab row: 8 * 16 f32 = 128 lanes
MIN_PALLAS_BATCH = 2048        # below this a fused XLA dot beats the Pallas launch
DEFAULT_TILE_SLAB_ROWS = 2048  # 2048 slab rows = 2 MiB x tile / 1 MiB out tile


def _round_up(n, m):
    return ((n + m - 1) // m) * m


def _packed_linear_kernel(x_ref, w_ref, b_ref, o_ref):
    # x_ref: (TBG, PACK*in_f)         slab tile of the input
    # w_ref: (PACK*in_f, PACK*out_f)  block-diagonal weight, resident across grid
    # b_ref: (1, PACK*out_f)          tiled bias, resident across grid
    # o_ref: (TBG, PACK*out_f)        lane-dense output slab tile (unmasked vst)
    y = jnp.dot(x_ref[...], w_ref[...],
                preferred_element_type=jnp.float32,
                precision=jax.lax.Precision.HIGHEST)
    o_ref[...] = (y + b_ref[...]).astype(o_ref.dtype)


def pack_params(weight, bias, pack=PACK):
    """One-time packing of PyTorch-layout params: weight (out_f,in_f), bias (out_f,)."""
    out_f, in_f = weight.shape
    wt = weight.T                                                 # (in_f, out_f)
    # Block-diagonal weight: w_block[g*in_f + k, g*out_f + j] = wt[k, j]
    w_block = jnp.kron(jnp.eye(pack, dtype=weight.dtype), wt)     # (pack*in_f, pack*out_f)
    b_row = jnp.tile(bias, pack).reshape(1, pack * out_f)         # (1, pack*out_f)
    return {"wt": wt, "bias": bias, "w_block": w_block, "b_row": b_row,
            "in_f": in_f, "out_f": out_f, "pack": pack}


def dqn_forward(x, params, *, tile_slab_rows=DEFAULT_TILE_SLAB_ROWS):
    """PyTorch-equivalent forward: x @ weight.T + bias (float32)."""
    B, in_f = x.shape
    assert in_f == params["in_f"]
    out_f, pack = params["out_f"], params["pack"]

    if B < MIN_PALLAS_BATCH:
        # Small / action-selection batches: a (B,32)@(32,16) matmul is a few
        # hundred ns of MXU work -- one fused XLA dot beats a Pallas launch
        # plus pad/reshape/slice plumbing.
        return jnp.dot(x, params["wt"],
                       precision=jax.lax.Precision.HIGHEST) + params["bias"]

    # ---- Pallas path: lane-dense packed-slab matmul with a batch-tiled grid ----
    # Minimal padding: only up to a multiple of PACK rows so the slab reshape
    # is a free row-major view; ragged last grid block -> Pallas edge handling.
    pad_b = _round_up(B, pack)
    if pad_b != B:
        x = jnp.pad(x, ((0, pad_b - B), (0, 0)))
    slab_rows = pad_b // pack
    x_slab = x.reshape(slab_rows, pack * in_f)          # free: row-major contiguous

    # Tile: up to ~2 MiB of x per grid step (amortises per-step overhead), but
    # never fewer than 2 tiles so the "parallel" axis splits across v7x's two
    # TensorCores.  Sublane dim kept a multiple of 8.
    tbg = min(tile_slab_rows, _round_up(pl.cdiv(slab_rows, 2), 8))
    n_tiles = pl.cdiv(slab_rows, tbg)

    out_slab = pl.pallas_call(
        _packed_linear_kernel,
        out_shape=jax.ShapeDtypeStruct((slab_rows, pack * out_f), x.dtype),
        grid=(n_tiles,),
        in_specs=[
            pl.BlockSpec((tbg, pack * in_f), lambda i: (i, 0)),
            # Constant (0,0) index maps: fetched once, VMEM-resident after.
            pl.BlockSpec((pack * in_f, pack * out_f), lambda i: (0, 0)),
            pl.BlockSpec((1, pack * out_f), lambda i: (0, 0)),
        ],
        out_specs=pl.BlockSpec((tbg, pack * out_f), lambda i: (i, 0)),
        compiler_params=pltpu.CompilerParams(
            # v7x: shard the batch (slab-row) axis over the two TensorCores.
            dimension_semantics=("parallel",),
        ),
    )(x_slab, params["w_block"], params["b_row"])

    # Free un-interleave (row-major view) + drop the <=7 padding rows.
    return out_slab.reshape(pad_b, out_f)[:B]


if __name__ == "__main__":
    # Synthetic environment: action_space() == (4, 4) -> space = 16
    SPACE = 4 * 4
    IN_FEATURES = SPACE * 2      # 32
    OUT_FEATURES = SPACE         # 16

    key = jax.random.PRNGKey(0)
    kx, kw, kb = jax.random.split(key, 3)

    # Deterministic init mimicking nn.Linear's uniform(-1/sqrt(in), 1/sqrt(in))
    bound = 1.0 / (IN_FEATURES ** 0.5)
    weight = jax.random.uniform(kw, (OUT_FEATURES, IN_FEATURES),
                                minval=-bound, maxval=bound, dtype=jnp.float32)
    bias = jax.random.uniform(kb, (OUT_FEATURES,),
                              minval=-bound, maxval=bound, dtype=jnp.float32)
    params = pack_params(weight, bias)            # packed once, reused per call

    fwd = jax.jit(lambda xb: dqn_forward(xb, params))

    def ref(xb):
        return jnp.dot(xb, weight.T, precision=jax.lax.Precision.HIGHEST) + bias

    # Replay-buffer-sized batch -> Pallas path, 2 grid tiles (dual-TC on v7x).
    BATCH = 4096
    x = jax.random.normal(kx, (BATCH, IN_FEATURES), dtype=jnp.float32)
    out = jax.block_until_ready(fwd(x))
    assert out.shape == (BATCH, OUT_FEATURES)
    assert jnp.allclose(out, ref(x), atol=1e-5, rtol=1e-5)

    # Ragged batch: exercises the minimal pad-to-8 + Pallas edge-block path.
    x_rag = jax.random.normal(kx, (4100, IN_FEATURES), dtype=jnp.float32)
    out_rag = jax.block_until_ready(fwd(x_rag))
    assert out_rag.shape == (4100, OUT_FEATURES)
    assert jnp.allclose(out_rag, ref(x_rag), atol=1e-5, rtol=1e-5)

    # Tiny action-selection batch: deliberately bypasses the Pallas launch.
    x_small = jax.random.normal(kx, (2, IN_FEATURES), dtype=jnp.float32)
    out_small = jax.block_until_ready(fwd(x_small))
    assert jnp.allclose(out_small, ref(x_small), atol=1e-5, rtol=1e-5)

    print("KERNEL_OK")
</pallas_src>

<mosaic_0001>
module attributes {stable_mosaic.version = 11 : i64} {
  func.func @_packed_linear_kernel(%arg0: i32, %arg1: memref<256x256xf32, #tpu.memory_space<vmem>>, %arg2: memref<256x128xf32, #tpu.memory_space<vmem>>, %arg3: memref<1x128xf32, #tpu.memory_space<vmem>>, %arg4: memref<256x128xf32, #tpu.memory_space<vmem>>) attributes {dimension_semantics = [#tpu.dimension_semantics<parallel>], iteration_bounds = array<i64: 2>, scalar_prefetch = 0 : i64, scratch_operands = 0 : i64, tpu.core_type = #tpu.core_type<tc>, window_params = [{transform_indices = @transform_0, window_bounds = array<i64: 256, 256>}, {pipeline_mode = #tpu.pipeline_mode<synchronous>, transform_indices = @transform_1, window_bounds = array<i64: 256, 128>}, {pipeline_mode = #tpu.pipeline_mode<synchronous>, transform_indices = @transform_2, window_bounds = array<i64: 1, 128>}, {transform_indices = @transform_3, window_bounds = array<i64: 256, 128>}]} {
    %c0 = arith.constant 0 : index
    %c0_0 = arith.constant 0 : index
    %0 = vector.load %arg1[%c0, %c0_0] : memref<256x256xf32, #tpu.memory_space<vmem>>, vector<256x256xf32>
    %c0_1 = arith.constant 0 : index
    %c0_2 = arith.constant 0 : index
    %1 = vector.load %arg2[%c0_1, %c0_2] : memref<256x128xf32, #tpu.memory_space<vmem>>, vector<256x128xf32>
    %cst = arith.constant dense<0.000000e+00> : vector<256x128xf32>
    %2 = tpu.matmul %0, %1, %cst {dimension_numbers = #tpu.dot_dimension_numbers<[1], [0], [0], [1], [0, 0, 1, 1], [], []>, precision = #tpu.contract_precision<fp32>} : vector<256x256xf32>, vector<256x128xf32>, vector<256x128xf32> -> vector<256x128xf32>
    %c0_3 = arith.constant 0 : index
    %c0_4 = arith.constant 0 : index
    %3 = vector.load %arg3[%c0_3, %c0_4] : memref<1x128xf32, #tpu.memory_space<vmem>>, vector<1x128xf32>
    %4 = vector.broadcast %3 : vector<1x128xf32> to vector<256x128xf32>
    %5 = arith.addf %2, %4 : vector<256x128xf32>
    %c0_5 = arith.constant 0 : index
    %c0_6 = arith.constant 0 : index
    %6 = vector.load %arg4[%c0_5, %c0_6] : memref<256x128xf32, #tpu.memory_space<vmem>>, vector<256x128xf32>
    tpu.vector_store %arg4[%c0_5, %c0_6], %5 {strides = array<i32>} : memref<256x128xf32, #tpu.memory_space<vmem>>, vector<256x128xf32>,
    return
  }
  func.func @transform_0(%arg0: i32) -> (i32, i32) {
    %c0_i32 = arith.constant 0 : i32
    %c0_i32_0 = arith.constant 0 : i32
    return %arg0, %c0_i32 : i32, i32
  }
  func.func @transform_1(%arg0: i32) -> (i32, i32) {
    %c0_i32 = arith.constant 0 : i32
    %c0_i32_0 = arith.constant 0 : i32
    %c0_i32_1 = arith.constant 0 : i32
    return %c0_i32, %c0_i32_0 : i32, i32
  }
  func.func @transform_2(%arg0: i32) -> (i32, i32) {
    %c0_i32 = arith.constant 0 : i32
    %c0_i32_0 = arith.constant 0 : i32
    %c0_i32_1 = arith.constant 0 : i32
    return %c0_i32, %c0_i32_0 : i32, i32
  }
  func.func @transform_3(%arg0: i32) -> (i32, i32) {
    %c0_i32 = arith.constant 0 : i32
    %c0_i32_0 = arith.constant 0 : i32
    return %arg0, %c0_i32 : i32, i32
  }
}

</mosaic_0001>

<bundles_post_ra>
// kernel: _lambda_.1
= control target key start
LH: loop header
LB: loop body
LE: loop exit
PB: predicated region body
PF: predicated region fallthrough
CT: control target
= control target key end

     0   :  { %s3626_s12 = smov 0   ;;  %s5376_s0 = inlined_call_operand.vmem [shape: f32[512,256], index: 0, kind: input, shape index: {}]   ;;  %s5377_s1 = inlined_call_operand.vmem [shape: f32[256,128], index: 1, kind: input, shape index: {}]   ;;  %s5378_s2 = inlined_call_operand.vmem [shape: f32[1,128], index: 2, kind: input, shape index: {}]   ;;  %s5379_s3 = inlined_call_operand.vmem [shape: f32[512,128], index: 3, kind: output, shape index: {}]  }
   0x1 LB: > { %s2966_s13 = sadd.s32 4294967295, %s3603_s12   ;;  %p2970_p0 = scmp.ge.s32.totalorder %s3603_s12, 1  ;;  %s3603_s12 = sphi %s3626_s12, %s13_s12  }
   0x2   : > { %p139_p1 = scmp.lt.s32.totalorder %s3603_s12, 3 }
   0x4   : > { %p140_p2 = pnand %p2970_p0, %p139_p1 }
   0x6   : > { %143 = sbr.rel (%p140_p2) target bundleno = 688 (0x2b0), region = 32 }
   0xd   : > { %v3637_v0 = vld [vmem:[%s5377_s1] sm:$0xff]  ;;  %v3642_v1 = vld [vmem:[%s5377_s1 + $0x8] sm:$0xff]  ;;  %v3647_v2 = vld [vmem:[%s5377_s1 + $0x10] sm:$0xff]  ;;  %s2971_s20 = sshll.u32 %s2966_s13, 5  ;;  %v5380_v3 = vmov 0.0|0.0  }
   0xe   : > { %2980 = vmatprep.subr.bf16.mxu1 %v5380_v3  ;;  %3124 = vmatprep.subr.bf16.mxu0 %v5380_v3  ;;  %v281_v4 = vand.u32 4294901760, %v3637_v0  ;;  %v284_v5 = vand.u32 4294901760, %v3642_v1  ;;  %v3656_v6 = vld [vmem:[%s5377_s1 + $0x18] sm:$0xff]  ;;  %v287_v7 = vand.u32 4294901760, %v3647_v2  ;;  %v3663_v9 = vld [vmem:[%s5377_s1 + $0x20] sm:$0xff]  ;;  %v3668_v10 = vld [vmem:[%s5377_s1 + $0x28] sm:$0xff] }
   0xf   : > { %v290_v8 = vand.u32 4294901760, %v3656_v6  ;;  %p165_p3 = scmp.lt.s32.totalorder %s2971_s20, 63  ;;  %v293_v13 = vand.u32 4294901760, %v3663_v9  ;;  %v296_v14 = vand.u32 4294901760, %v3668_v10  ;;  %v3691_v15 = vld [vmem:[%s5377_s1 + $0x30] sm:$0xff]  ;;  %v3696_v16 = vld [vmem:[%s5377_s1 + $0x38] sm:$0xff] }
  0x10   : > { %v3674_v11 = vpack.c.bf16 %v284_v5, %v281_v4  ;;  %v299_v18 = vand.u32 4294901760, %v3691_v15  ;;  %v302_v19 = vand.u32 4294901760, %v3696_v16  ;;  %v3715_v20 = vld [vmem:[%s5377_s1 + $0x40] sm:$0xff]  ;;  %v3720_v21 = vld [vmem:[%s5377_s1 + $0x48] sm:$0xff]  ;;  %v3738_v25 = vld [vmem:[%s5377_s1 + $0x50] sm:$0xff]  ;;  %v3857_v61 = vsub.f32 %v3637_v0, %v281_v4 }
  0x11   : > { %v3682_v12 = vpack.c.bf16 %v290_v8, %v287_v7  ;;  %s6012_s20 = smov (!%p165_p3, %s2971_s20), 63  ;;  %v3706_v17 = vpack.c.bf16 %v296_v14, %v293_v13  ;;  %v305_v23 = vand.u32 4294901760, %v3715_v20  ;;  %v308_v24 = vand.u32 4294901760, %v3720_v21  ;;  %v3743_v26 = vld [vmem:[%s5377_s1 + $0x58] sm:$0xff]  ;;  %v3766_v31 = vld [vmem:[%s5377_s1 + $0x60] sm:$0xff]  ;;  %v3771_v32 = vld [vmem:[%s5377_s1 + $0x68] sm:$0xff] }
  0x12   : > { %5589 = vst [vmem:[#allocation2_spill] sm:$0xff] %v3674_v11  ;;  %2982 = vmatpush1.bf16.msra.mxu1 %v3674_v11  ;;  %3126 = vmatpush1.bf16.msra.mxu0 %v3674_v11  ;;  %s2979_s8 = sshll.u32 %s6012_s20, 4  ;;  %v3729_v22 = vpack.c.bf16 %v302_v19, %v299_v18  ;;  %v311_v28 = vand.u32 4294901760, %v3738_v25  ;;  %v314_v29 = vand.u32 4294901760, %v3743_v26  ;;  %v317_v35 = vand.u32 4294901760, %v3766_v31  ;;  %v3790_v37 = vld [vmem:[%s5377_s1 + $0x70] sm:$0xff] }
  0x13   : > { %5590 = vst [vmem:[#allocation3_spill] sm:$0xff] %v3682_v12  ;;  %2983 = vmatprep.subr.bf16.mxu1 %v5380_v3  ;;  %3127 = vmatprep.subr.bf16.mxu0 %v5380_v3  ;;  %5591 = vst [vmem:[#allocation4_spill] sm:$0xff] %v3706_v17  ;;  %s3748_s16 = scalar_lea.vmem %s5376_s0, %s2979_s8  ;;  %v3756_v27 = vpack.c.bf16 %v308_v24, %v305_v23  ;;  %v320_v36 = vand.u32 4294901760, %v3771_v32  ;;  %v3795_v38 = vld [vmem:[%s5377_s1 + $0x78] sm:$0xff]  ;;  %v323_v42 = vand.u32 4294901760, %v3790_v37  ;;  %v3816_v44 = vld [vmem:[%s5377_s1 + $0x80] sm:$0xff] }
  0x14   : > { %5592 = vst [vmem:[#allocation5_spill] sm:$0xff] %v3729_v22  ;;  %v178_v30 = vld [vmem:[%s3748_s16 + $0x8] sm:$0xff]  ;;  %v3781_v34 = vpack.c.bf16 %v314_v29, %v311_v28  ;;  %v326_v43 = vand.u32 4294901760, %v3795_v38  ;;  %v329_v49 = vand.u32 4294901760, %v3816_v44  ;;  %v259_v51 = vld [vmem:[%s5377_s1 + $0x90] sm:$0xff]  ;;  %v260_v52 = vld [vmem:[%s5377_s1 + $0x98] sm:$0xff]  ;;  %v3862_v62 = vsub.f32 %v3642_v1, %v284_v5 }
  0x15   : > { %5593 = vst [vmem:[#allocation6_spill] sm:$0xff] %v3756_v27  ;;  %v3773_v33 = vand.u32 4294901760, %v178_v30  ;;  %v3807_v41 = vpack.c.bf16 %v320_v36, %v317_v35  ;;  %v3821_v45 = vld [vmem:[%s5377_s1 + $0x88] sm:$0xff]  ;;  %v335_v54 = vand.u32 4294901760, %v259_v51  ;;  %v338_v55 = vand.u32 4294901760, %v260_v52  ;;  %v261_v56 = vld [vmem:[%s5377_s1 + $0xa0] sm:$0xff] }
  0x16   : > { %2985 = vmatpush1.bf16.msra.mxu1 %v3682_v12  ;;  %3129 = vmatpush1.bf16.msra.mxu0 %v3682_v12  ;;  %5595 = vst [vmem:[#allocation8_spill] sm:$0xff] %v3781_v34  ;;  %v3826_v48 = vpack.c.bf16 %v326_v43, %v323_v42  ;;  %v332_v50 = vand.u32 4294901760, %v3821_v45  ;;  %v262_v57 = vld [vmem:[%s5377_s1 + $0xa8] sm:$0xff]  ;;  %v341_v59 = vand.u32 4294901760, %v261_v56  ;;  %5601 = vst [vmem:[#allocation14_spill] sm:$0xff] %v3857_v61  ;;  %v263_v63 = vld [vmem:[%s5377_s1 + $0xb0] sm:$0xff] }
  0x17   : > { %2986 = vmatprep.subr.bf16.mxu1 %v5380_v3  ;;  %3130 = vmatprep.subr.bf16.mxu0 %v5380_v3  ;;  %5594 = vst [vmem:[#allocation7_spill] sm:$0xff] %v3773_v33  ;;  %v3798_v39 = vsub.f32 %v178_v30, %v3773_v33  ;;  %5597 = vst [vmem:[#allocation10_spill] sm:$0xff] %v3807_v41  ;;  %v3852_v58 = vpack.c.bf16 %v338_v55, %v335_v54  ;;  %v344_v60 = vand.u32 4294901760, %v262_v57  ;;  %v264_v30 = vld [vmem:[%s5377_s1 + $0xb8] sm:$0xff]  ;;  %v185_v11 = vld [vmem:[%s3748_s16 + $0x40] sm:$0xff]  ;;  %s2975_s8 = sshll.u32 %s6012_s20, 3 }
  0x18   : > { %5598 = vst [vmem:[#allocation11_spill] sm:$0xff] %v3826_v48  ;;  %v3840_v53 = vpack.c.bf16 %v332_v50, %v329_v49  ;;  %5602 = vst [vmem:[#allocation15_spill] sm:$0xff] %v3862_v62  ;;  %v3875_v0 = vsub.f32 %v3647_v2, %v287_v7  ;;  %v3880_v1 = vsub.f32 %v3656_v6, %v290_v8  ;;  %s5308_s11 = scalar_lea.vmem %s5379_s3, %s2975_s8 }
  0x19   : > { %5596 = vst [vmem:[#allocation9_spill] sm:$0xff] %v3798_v39  ;;  %v378_v40 = vand.u32 4294901760, %v3798_v39  ;;  %5600 = vst [vmem:[#allocation13_spill] sm:$0xff] %v3852_v58  ;;  %v3885_v4 = vsub.f32 %v3663_v9, %v293_v13  ;;  %v3890_v5 = vsub.f32 %v3668_v10, %v296_v14  ;;  %v3895_v2 = vsub.f32 %v3691_v15, %v299_v18  ;;  %v265_v9 = vld [vmem:[%s5377_s1 + $0xc0] sm:$0xff]  ;;  %v266_v10 = vld [vmem:[%s5377_s1 + $0xc8] sm:$0xff] }
  0x1a   : > { %2988 = vmatpush1.bf16.msra.mxu1 %v3706_v17  ;;  %3132 = vmatpush1.bf16.msra.mxu0 %v3706_v17  ;;  %5599 = vst [vmem:[#allocation12_spill] sm:$0xff] %v3840_v53  ;;  %5603 = vst [vmem:[#allocation16_spill] sm:$0xff] %v3875_v0  ;;  %v3900_v6 = vsub.f32 %v3696_v16, %v302_v19  ;;  %v3905_v7 = vsub.f32 %v3715_v20, %v305_v23  ;;  %v347_v15 = vand.u32 4294901760, %v263_v63  ;;  %v177_v18 = vld [vmem:[%s3748_s16] sm:$0xff]  ;;  %v267_v23 = vld [vmem:[%s5377_s1 + $0xd0] sm:$0xff] }
  0x1b   : > { %2989 = vmatprep.subr.bf16.mxu1 %v5380_v3  ;;  %3133 = vmatprep.subr.bf16.mxu0 %v5380_v3  ;;  %v379_v46 = vsub.f32 %v3798_v39, %v378_v40  ;;  %5604 = vst [vmem:[#allocation17_spill] sm:$0xff] %v3880_v1  ;;  %5605 = vst [vmem:[#allocation18_spill] sm:$0xff] %v3885_v4  ;;  %v3910_v8 = vsub.f32 %v3720_v21, %v308_v24  ;;  %v350_v16 = vand.u32 4294901760, %v264_v30 }
  0x1c   : > { %1822 = vmatprep.mubr.f32.mxu0 %v378_v40  ;;  %5606 = vst [vmem:[#allocation19_spill] sm:$0xff] %v3890_v5  ;;  %v3921_v13 = vsub.f32 %v3738_v25, %v311_v28  ;;  %v3925_v14 = vpack.c.bf16 %v344_v60, %v341_v59  ;;  %v3931_v19 = vsub.f32 %v3743_v26, %v314_v29  ;;  %v353_v26 = vand.u32 4294901760, %v265_v9  ;;  %v268_v29 = vld [vmem:[%s5377_s1 + $0xd8] sm:$0xff] }
  0x1d   : > { %v380_v47 = vand.u32 4294901760, %v379_v46  ;;  %v3936_v20 = vsub.f32 %v3766_v31, %v317_v35  ;;  %v3941_v21 = vsub.f32 %v3771_v32, %v320_v36  ;;  %v3949_v24 = vsub.f32 %v3790_v37, %v323_v42  ;;  %v180_v31 = vld [vmem:[%s3748_s16 + $0x18] sm:$0xff]  ;;  %v179_v32 = vld [vmem:[%s3748_s16 + $0x10] sm:$0xff] }
  0x1e   : > { %2991 = vmatpush1.bf16.msra.mxu1 %v3729_v22  ;;  %3135 = vmatpush1.bf16.msra.mxu0 %v3729_v22  ;;  %5607 = vst [vmem:[#allocation20_spill] sm:$0xff] %v3925_v14  ;;  %v3952_v25 = vsub.f32 %v3795_v38, %v326_v43  ;;  %v356_v28 = vand.u32 4294901760, %v266_v10  ;;  %v3960_v35 = vsub.f32 %v3816_v44, %v329_v49  ;;  %v3967_v37 = vand.u32 4294901760, %v177_v18  ;;  %v182_v38 = vld [vmem:[%s3748_s16 + $0x28] sm:$0xff]  ;;  %v269_v49 = vld [vmem:[%s5377_s1 + $0xe0] sm:$0xff] }
  0x1f   : > { %2992 = vmatprep.subr.bf16.mxu1 %v5380_v3  ;;  %3136 = vmatprep.subr.bf16.mxu0 %v5380_v3  ;;  %v3963_v36 = vsub.f32 %v3821_v45, %v332_v50  ;;  %v3965_v40 = vsub.f32 %v259_v51, %v335_v54  ;;  %v3970_v42 = vsub.f32 %v260_v52, %v338_v55  ;;  %v359_v44 = vand.u32 4294901760, %v267_v23  ;;  %v181_v52 = vld [vmem:[%s3748_s16 + $0x20] sm:$0xff] }
  0x20   : > { %381 = vmatprep.mubr.f32.mxu1 %v380_v47  ;;  %5608 = vst [vmem:[#allocation21_spill] sm:$0xff] %v3967_v37  ;;  %v3973_v43 = vsub.f32 %v261_v56, %v341_v59  ;;  %v3976_v46 = vpack.c.bf16 %v350_v16, %v347_v15  ;;  %v3978_v47 = vsub.f32 %v262_v57, %v344_v60  ;;  %v362_v45 = vand.u32 4294901760, %v268_v29  ;;  %v270_v57 = vld [vmem:[%s5377_s1 + $0xe8] sm:$0xff] }
  0x21   : > { %v3985_v50 = vand.u32 4294901760, %v180_v31  ;;  %v3987_v51 = vand.u32 4294901760, %v179_v32  ;;  %v3990_v54 = vsub.f32 %v263_v63, %v347_v15  ;;  %v3992_v55 = vsub.f32 %v264_v30, %v350_v16  ;;  %v4011_v63 = vld [vmem:[%s5377_s1 + $0xf8] sm:$0xff] }
  0x22   : > { %2994 = vmatpush1.bf16.msra.mxu1 %v3756_v27  ;;  %3138 = vmatpush1.bf16.msra.mxu0 %v3756_v27  ;;  %5609 = vst [vmem:[#allocation22_spill] sm:$0xff] %v3976_v46  ;;  %v3994_v56 = vpack.c.bf16 %v356_v28, %v353_v26  ;;  %v3999_v59 = vand.u32 4294901760, %v182_v38  ;;  %v4001_v60 = vsub.f32 %v265_v9, %v353_v26  ;;  %5615 = vst [vmem:[#allocation28_spill] sm:$0xff] %v4011_v63 }
  0x23   : > { %2995 = vmatprep.subr.bf16.mxu1 %v5380_v3  ;;  %3139 = vmatprep.subr.bf16.mxu0 %v5380_v3  ;;  %5610 = vst [vmem:[#allocation23_spill] sm:$0xff] %v3985_v50  ;;  %5611 = vst [vmem:[#allocation24_spill] sm:$0xff] %v3987_v51  ;;  %v4014_v30 = vsub.f32 %v177_v18, %v3967_v37  ;;  %v860_v15 = vand.u32 4294901760, %v3857_v61  ;;  %v867_v16 = vand.u32 4294901760, %v3862_v62  ;;  %v365_v39 = vand.u32 4294901760, %v269_v49 }
  0x24   : > { %5612 = vst [vmem:[#allocation25_spill] sm:$0xff] %v3994_v56  ;;  %5613 = vst [vmem:[#allocation26_spill] sm:$0xff] %v3999_v59  ;;  %v4020_v9 = vsub.f32 %v266_v10, %v356_v28  ;;  %v4022_v26 = vsub.f32 %v267_v23, %v359_v44  ;;  %v4029_v18 = vpack.c.bf16 %v362_v45, %v359_v44  ;;  %v183_v23 = vld [vmem:[%s3748_s16 + $0x30] sm:$0xff] }
  0x25   : > { %5616 = vst [vmem:[#allocation29_spill] sm:$0xff] %v4014_v30  ;;  %v4035_v10 = vsub.f32 %v179_v32, %v3987_v51  ;;  %v4038_v28 = vsub.f32 %v268_v29, %v362_v45  ;;  %v4043_v27 = vsub.f32 %v182_v38, %v3999_v59  ;;  %v861_v22 = vsub.f32 %v3857_v61, %v860_v15  ;;  %v186_v32 = vld [vmem:[%s3748_s16 + $0x48] sm:$0xff] }
  0x26   : > { %2997 = vmatpush1.bf16.msra.mxu1 %v3781_v34  ;;  %3141 = vmatpush1.bf16.msra.mxu0 %v3781_v34  ;;  %5617 = vst [vmem:[#allocation30_spill] sm:$0xff] %v4020_v9  ;;  %5618 = vst [vmem:[#allocation31_spill] sm:$0xff] %v4022_v26  ;;  %v4058_v44 = vand.u32 4294901760, %v183_v23  ;;  %v5633_v45 = vand.u32 4294901760, %v4011_v63  ;;  %v4077_v51 = vand.u32 4294901760, %v186_v32  ;;  %v5639_v59 = vand.u32 4294901760, %v3880_v1 }
  0x27   : > { %2998 = vmatprep.subr.bf16.mxu1 %v5380_v3  ;;  %3142 = vmatprep.subr.bf16.mxu0 %v5380_v3  ;;  %5621 = vst [vmem:[#allocation33_spill] sm:$0xff] %v4029_v18  ;;  %5623 = vst [vmem:[#allocation35_spill] sm:$0xff] %v4035_v10  ;;  %v187_v63 = vld [vmem:[%s3748_s16 + $0x50] sm:$0xff] }
  0x28   : > { %5624 = vst [vmem:[#allocation36_spill] sm:$0xff] %v4038_v28  ;;  %5625 = vst [vmem:[#allocation37_spill] sm:$0xff] %v4043_v27  ;;  %v4120_v37 = vsub.f32 %v186_v32, %v4077_v51 }
  0x29   : > { %5628 = vst [vmem:[#allocation40_spill] sm:$0xff] %v4058_v44  ;;  %5635 = vst [vmem:[#allocation45_spill] sm:$0xff] %v4077_v51 }
  0x2a   : > { %3000 = vmatpush1.bf16.msra.mxu1 %v3807_v41  ;;  %3144 = vmatpush1.bf16.msra.mxu0 %v3807_v41  ;;  %v4032_v41 = vsub.f32 %v180_v31, %v3985_v50  ;;  %v868_v31 = vsub.f32 %v3862_v62, %v867_v16  ;;  %5645 = vst [vmem:[#allocation49_spill] sm:$0xff] %v4120_v37 }
  0x2b   : > { %3001 = vmatprep.subr.bf16.mxu1 %v5380_v3  ;;  %3145 = vmatprep.subr.bf16.mxu0 %v5380_v3 }
  0x2c   : > { %5622 = vst [vmem:[#allocation34_spill] sm:$0xff] %v4032_v41  ;;  %v869_v12 = vand.u32 4294901760, %v868_v31  ;;  %v5641_v31 = vand.u32 4294901760, %v4032_v41 }
  0x2e   : > { %3003 = vmatpush1.bf16.msra.mxu1 %v3826_v48  ;;  %3147 = vmatpush1.bf16.msra.mxu0 %v3826_v48  ;;  %v368_v48 = vand.u32 4294901760, %v270_v57 }
  0x2f   : > { %3004 = vmatprep.subr.bf16.mxu1 %v5380_v3  ;;  %3148 = vmatprep.subr.bf16.mxu0 %v5380_v3 }
  0x30   : > { %v4062_v34 = vpack.c.bf16 %v368_v48, %v365_v39 }
  0x32   : > { %3006 = vmatpush1.bf16.msra.mxu1 %v3840_v53  ;;  %3150 = vmatpush1.bf16.msra.mxu0 %v3840_v53  ;;  %v5620_v53 = vmov 0.0|0.0   ;;  %5629 = vst [vmem:[#allocation41_spill] sm:$0xff] %v4062_v34 }
  0x33   : > { %3007 = vmatprep.subr.bf16.mxu1 %v5380_v3  ;;  %3151 = vmatprep.subr.bf16.mxu0 %v5380_v3 }
  0x36   : > { %3009 = vmatpush1.bf16.msra.mxu1 %v3852_v58  ;;  %3153 = vmatpush1.bf16.msra.mxu0 %v3852_v58  ;;  %v184_v58 = vld [vmem:[%s3748_s16 + $0x38] sm:$0xff] }
  0x37   : > { %3010 = vmatprep.subr.bf16.mxu1 %v5380_v3  ;;  %3154 = vmatprep.subr.bf16.mxu0 %v5380_v3  ;;  %v4048_v17 = vand.u32 4294901760, %v184_v58 }
  0x39   : > { %5626 = vst [vmem:[#allocation38_spill] sm:$0xff] %v4048_v17 }
  0x3a   : > { %3012 = vmatpush1.bf16.msra.mxu1 %v3925_v14  ;;  %3156 = vmatpush1.bf16.msra.mxu0 %v3925_v14  ;;  %v4024_v14 = vand.u32 4294901760, %v181_v52 }
  0x3b   : > { %3013 = vmatprep.subr.bf16.mxu1 %v5380_v3  ;;  %3157 = vmatprep.subr.bf16.mxu0 %v5380_v3  ;;  %v4006_v3 = vld [vmem:[%s5377_s1 + $0xf0] sm:$0xff] }
  0x3c   : > { %5614 = vst [vmem:[#allocation27_spill] sm:$0xff] %v4006_v3  ;;  %5619 = vst [vmem:[#allocation32_spill] sm:$0xff] %v4024_v14  ;;  %v4054_v29 = vsub.f32 %v181_v52, %v4024_v14  ;;  %v4068_v52 = vsub.f32 %v270_v57, %v368_v48  ;;  %v5632_v38 = vand.u32 4294901760, %v4006_v3  ;;  %v4086_v48 = vsub.f32 %v184_v58, %v4048_v17  ;;  %v188_v58 = vld [vmem:[%s3748_s16 + $0x58] sm:$0xff] }
  0x3d   : > { %v394_v57 = vsub.f32 %v4032_v41, %v5641_v31  ;;  %v4111_v17 = vand.u32 4294901760, %v185_v11  ;;  %v895_v31 = vand.u32 4294901760, %v3890_v5  ;;  %v4125_v33 = vand.u32 4294901760, %v188_v58 }
  0x3e   : > { %3015 = vmatpush1.bf16.msra.mxu1 %v3976_v46  ;;  %3159 = vmatpush1.bf16.msra.mxu0 %v3976_v46  ;;  %5627 = vst [vmem:[#allocation39_spill] sm:$0xff] %v4054_v29  ;;  %v4064_v46 = vsub.f32 %v269_v49, %v365_v39  ;;  %5631 = vst [vmem:[#allocation43_spill] sm:$0xff] %v4068_v52  ;;  %v4074_v14 = vpack.c.bf16 %v5633_v45, %v5632_v38  ;;  %v5636_v39 = vand.u32 4294901760, %v4014_v30 }
  0x3f   : > { %3016 = vmatprep.subr.bf16.mxu1 %v5620_v53  ;;  %3160 = vmatprep.subr.bf16.mxu0 %v5620_v53  ;;  %5637 = vst [vmem:[#allocation46_spill] sm:$0xff] %v4086_v48  ;;  %v5638_v38 = vand.u32 4294901760, %v3875_v0  ;;  %5643 = vst [vmem:[#allocation48_spill] sm:$0xff] %v4111_v17  ;;  %v896_v51 = vsub.f32 %v3890_v5, %v895_v31  ;;  %v4148_v52 = vand.u32 4294901760, %v187_v63  ;;  %v5650_v3 = vand.u32 4294901760, %v4086_v48 }
  0x40   : > { %5630 = vst [vmem:[#allocation42_spill] sm:$0xff] %v4064_v46  ;;  %5634 = vst [vmem:[#allocation44_spill] sm:$0xff] %v4074_v14  ;;  %v4083_v49 = vsub.f32 %v4014_v30, %v5636_v39  ;;  %v882_v39 = vsub.f32 %v3880_v1, %v5639_v59  ;;  %v888_v59 = vand.u32 4294901760, %v3885_v4  ;;  %v5652_v5 = vand.u32 4294901760, %v3875_v0 }
  0x41   : > { %v875_v45 = vsub.f32 %v3875_v0, %v5638_v38  ;;  %5646 = vst [vmem:[#allocation50_spill] sm:$0xff] %v4125_v33  ;;  %5649 = vst [vmem:[#allocation52_spill] sm:$0xff] %v4148_v52  ;;  %v4153_v46 = vsub.f32 %v4086_v48, %v5650_v3  ;;  %v5653_v3 = vand.u32 4294901760, %v3880_v1  ;;  %v191_v0 = vld [vmem:[%s3748_s16 + $0x70] sm:$0xff] }
  0x42   : > { %3018 = vmatpush1.bf16.msra.mxu1 %v3994_v56  ;;  %3162 = vmatpush1.bf16.msra.mxu0 %v3994_v56  ;;  %v862_v56 = vand.u32 4294901760, %v861_v22  ;;  %v4098_v22 = vsub.f32 %v183_v23, %v4058_v44  ;;  %v3173_v23 = vpack.c.bf16 %v867_v16, %v860_v15  ;;  %v5644_v44 = vand.u32 4294901760, %v4043_v27 }
  0x43   : > { %3019 = vmatprep.subr.bf16.mxu1 %v5620_v53  ;;  %3163 = vmatprep.subr.bf16.mxu0 %v5620_v53  ;;  %v5647_v15 = vand.u32 4294901760, %v4054_v29  ;;  %v883_v32 = vand.u32 4294901760, %v882_v39  ;;  %v425_v28 = vand.u32 4294901760, %v4153_v46  ;;  %v5660_v46 = vand.u32 4294901760, %v4032_v41 }
  0x44   : > { %5640 = vst [vmem:[#allocation47_spill] sm:$0xff] %v4098_v22  ;;  %v4117_v50 = vsub.f32 %v4043_v27, %v5644_v44  ;;  %v3029_v62 = vpack.c.bf16 %v869_v12, %v862_v56  ;;  %v876_v44 = vand.u32 4294901760, %v875_v45  ;;  %v189_v12 = vld [vmem:[%s3748_s16 + $0x60] sm:$0xff]  ;;  %v395_v56 = vand.u32 4294901760, %v394_v57 }
  0x45   : > { %v4133_v16 = vsub.f32 %v4054_v29, %v5647_v15  ;;  %v889_v15 = vsub.f32 %v3885_v4, %v888_v59  ;;  %v4156_v57 = vsub.f32 %v188_v58, %v4125_v33  ;;  %v3176_v4 = vpack.c.bf16 %v5653_v3, %v5652_v5 }
  0x46   : > { %3021 = vmatpush1.bf16.msra.mxu1 %v4029_v18  ;;  %3165 = vmatpush1.bf16.msra.mxu0 %v4029_v18  ;;  %v5642_v18 = vand.u32 4294901760, %v4035_v10  ;;  %v410_v45 = vand.u32 4294901760, %v4117_v50  ;;  %v3032_v39 = vpack.c.bf16 %v883_v32, %v876_v44  ;;  %v5654_v58 = vand.u32 4294901760, %v4098_v22 }
  0x47   : > { %3022 = vmatprep.subr.bf16.mxu1 %v5620_v53  ;;  %3166 = vmatprep.subr.bf16.mxu0 %v5620_v53  ;;  %5651 = vst [vmem:[#allocation53_spill] sm:$0xff] %v4156_v57  ;;  %v902_v50 = vand.u32 4294901760, %v3895_v2  ;;  %v909_v44 = vand.u32 4294901760, %v3900_v6  ;;  %v5655_v32 = vand.u32 4294901760, %v4120_v37  ;;  %v897_v3 = vand.u32 4294901760, %v896_v51 }
  0x48   : > { %v4109_v38 = vsub.f32 %v4035_v10, %v5642_v18  ;;  %v386_v18 = vand.u32 4294901760, %v4083_v49  ;;  %v190_v49 = vld [vmem:[%s3748_s16 + $0x68] sm:$0xff]  ;;  %v4173_v33 = vsub.f32 %v4098_v22, %v5654_v58  ;;  %v4186_v58 = vsub.f32 %v187_v63, %v4148_v52 }
  0x49   : > { %v4183_v5 = vsub.f32 %v4120_v37, %v5655_v32  ;;  %v3179_v63 = vpack.c.bf16 %v895_v31, %v888_v59  ;;  %v194_v52 = vld [vmem:[%s3748_s16 + $0x88] sm:$0xff]  ;;  %v4214_v59 = vand.u32 4294901760, %v191_v0  ;;  %v5665_v51 = vand.u32 4294901760, %v4156_v57 }
  0x4a   : > { %3024 = vmatpush1.bf16.msra.mxu1 %v4062_v34  ;;  %3168 = vmatpush1.bf16.msra.mxu0 %v4062_v34  ;;  %v401_v61 = vand.u32 4294901760, %v4109_v38  ;;  %v4142_v34 = vsub.f32 %v185_v11, %v4111_v17  ;;  %v4158_v11 = vand.u32 4294901760, %v190_v49  ;;  %v4160_v38 = vand.u32 4294901760, %v189_v12  ;;  %v192_v17 = vld [vmem:[%s3748_s16 + $0x78] sm:$0xff]  ;;  %5656 = vst [vmem:[#allocation54_spill] sm:$0xff] %v4186_v58 }
  0x4b   : > { %3025 = vmatprep.subr.bf16.mxu1 %v5620_v53  ;;  %3169 = vmatprep.subr.bf16.mxu0 %v5620_v53  ;;  %v4188_v1 = vand.u32 4294901760, %v192_v17  ;;  %5662 = vst [vmem:[#allocation57_spill] sm:$0xff] %v4214_v59  ;;  %v440_v31 = vand.u32 4294901760, %v4183_v5  ;;  %v4232_v5 = vand.u32 4294901760, %v194_v52 }
  0x4c   : > { %5648 = vst [vmem:[#allocation51_spill] sm:$0xff] %v4142_v34  ;;  %v4196_v9 = vsub.f32 %v190_v49, %v4158_v11  ;;  %v4199_v32 = vsub.f32 %v189_v12, %v4160_v38  ;;  %v5661_v49 = vand.u32 4294901760, %v4142_v34  ;;  %v910_v12 = vsub.f32 %v3900_v6, %v909_v44 }
  0x4d   : > { %5666 = vst [vmem:[#allocation59_spill] sm:$0xff] %v4232_v5 }
  0x4e   : > { %3027 = vmatpush1.bf16.msra.mxu1 %v4074_v14  ;;  %3171 = vmatpush1.bf16.msra.mxu0 %v4074_v14  ;;  %v890_v14 = vand.u32 4294901760, %v889_v15  ;;  %v5657_v15 = vand.u32 4294901760, %v4014_v30  ;;  %5658 = vst [vmem:[#allocation55_spill] sm:$0xff] %v4196_v9  ;;  %5659 = vst [vmem:[#allocation56_spill] sm:$0xff] %v4199_v32  ;;  %v4210_v26 = vsub.f32 %v4142_v34, %v5661_v49  ;;  %v5664_v49 = vand.u32 4294901760, %v4035_v10 }
  0x4f   : > { %3028 = vmatprep.subr.bf16.mxu1 %v5620_v53  ;;  %3172 = vmatprep.subr.bf16.mxu0 %v5620_v53  ;;  %v5680_v10 = vand.u32 4294901760, %v3931_v19 }
  0x50   : > { %v446_v41 = vand.u32 4294901760, %v4210_v26 }
  0x51   : > { %387 = vmatmul.mubr.f32.vlgmr.msra.gmra.mrb[0].mxu1 %v386_v18  ;;  %1826 = vmatmul.mubr.f32.vlgmr.msra.gmra.mrb[0].mxu0 %v5657_v15  ;;  %v4228_v15 = vsub.f32 %v4156_v57, %v5665_v51  ;;  %v5675_v18 = vand.u32 4294901760, %v4196_v9 }
  0x52   : > { %3030 = vmatpush1.bf16.msra.mxu1 %v3029_v62  ;;  %396 = vmatprep.mubr.f32.mxu1 %v395_v56  ;;  %v903_v62 = vsub.f32 %v3895_v2, %v902_v50  ;;  %v3035_v56 = vpack.c.bf16 %v897_v3, %v890_v14  ;;  %v193_v14 = vld [vmem:[%s3748_s16 + $0x80] sm:$0xff] }
  0x53   : > { %1833 = vmatprep.mubr.f32.mxu0 %v5660_v46  ;;  %3174 = vmatpush1.bf16.msra.mxu0 %v3173_v23  ;;  %v4221_v46 = vsub.f32 %v192_v17, %v4188_v1  ;;  %v5667_v17 = vand.u32 4294901760, %v4043_v27  ;;  %v911_v27 = vand.u32 4294901760, %v910_v12  ;;  %v4257_v26 = vand.u32 4294901760, %v193_v14 }
  0x54   : > { %3031 = vmatprep.subr.bf16.mxu1 %v5620_v53  ;;  %3175 = vmatprep.subr.bf16.mxu0 %v5620_v53  ;;  %v455_v12 = vand.u32 4294901760, %v4228_v15  ;;  %v4267_v23 = vsub.f32 %v4196_v9, %v5675_v18 }
  0x55   : > { %5663 = vst [vmem:[#allocation58_spill] sm:$0xff] %v4221_v46  ;;  %402 = vmatmul.mubr.f32.gmra.mrb[2].mxu1 %v401_v61  ;;  %1837 = vmatmul.mubr.f32.gmra.mrb[2].mxu0 %v5664_v49  ;;  %v5668_v61 = vand.u32 4294901760, %v3905_v7  ;;  %v5669_v49 = vand.u32 4294901760, %v3910_v8  ;;  %5672 = vst [vmem:[#allocation61_spill] sm:$0xff] %v4257_v26 }
  0x56   : > { %411 = vmatprep.mubr.f32.mxu1 %v410_v45  ;;  %1844 = vmatprep.mubr.f32.mxu0 %v5667_v17  ;;  %v904_v45 = vand.u32 4294901760, %v903_v62  ;;  %v4247_v17 = vsub.f32 %v191_v0, %v4214_v59  ;;  %v5673_v62 = vand.u32 4294901760, %v4133_v16  ;;  %v5674_v0 = vand.u32 4294901760, %v4054_v29  ;;  %v196_v16 = vld [vmem:[%s3748_s16 + $0x98] sm:$0xff] }
  0x57   : > { %v917_v3 = vsub.f32 %v3905_v7, %v5668_v61  ;;  %v924_v51 = vsub.f32 %v3910_v8, %v5669_v49  ;;  %3033 = vmatpush1.bf16.msra.mxu1 %v3032_v39  ;;  %3177 = vmatpush1.bf16.msra.mxu0 %v3176_v4  ;;  %v5671_v61 = vand.u32 4294901760, %v4186_v58  ;;  %v3182_v39 = vpack.c.bf16 %v909_v44, %v902_v50 }
  0x58   : > { %5670 = vst [vmem:[#allocation60_spill] sm:$0xff] %v4247_v17  ;;  %3034 = vmatprep.subr.bf16.mxu1 %v5620_v53  ;;  %3178 = vmatprep.subr.bf16.mxu0 %v5620_v53  ;;  %v4275_v50 = vsub.f32 %v194_v52, %v4232_v5  ;;  %v5678_v44 = vand.u32 4294901760, %v4086_v48  ;;  %v5679_v29 = vand.u32 4294901760, %v3921_v13  ;;  %v3038_v52 = vpack.c.bf16 %v911_v27, %v904_v45 }
  0x59   : > { %v4254_v49 = vsub.f32 %v4186_v58, %v5671_v61  ;;  %417 = vmatmul.mubr.f32.gmra.mrb[4].mxu1 %v5673_v62  ;;  %1848 = vmatmul.mubr.f32.gmra.mrb[4].mxu0 %v5674_v0  ;;  %v5676_v61 = vand.u32 4294901760, %v4199_v32  ;;  %v918_v62 = vand.u32 4294901760, %v917_v3  ;;  %v925_v15 = vand.u32 4294901760, %v924_v51  ;;  %v195_v0 = vld [vmem:[%s3748_s16 + $0x90] sm:$0xff] }
  0x5a   : > { %5677 = vst [vmem:[#allocation62_spill] sm:$0xff] %v4275_v50  ;;  %426 = vmatprep.mubr.f32.mxu1 %v425_v28  ;;  %1855 = vmatprep.mubr.f32.mxu0 %v5678_v44  ;;  %v931_v18 = vsub.f32 %v3921_v13, %v5679_v29  ;;  %v5681_v29 = vand.u32 4294901760, %v4221_v46  ;;  %v4299_v27 = vsub.f32 %v193_v14, %v4257_v26  ;;  %v5685_v51 = vand.u32 4294901760, %v4098_v22  ;;  %v198_v22 = vld [vmem:[%s3748_s16 + $0xa8] sm:$0xff] }
  0x5b   : > { %v4272_v4 = vsub.f32 %v4199_v32, %v5676_v61  ;;  %v938_v61 = vsub.f32 %v3931_v19, %v5680_v10  ;;  %3036 = vmatpush1.bf16.msra.mxu1 %v3035_v56  ;;  %3180 = vmatpush1.bf16.msra.mxu0 %v3179_v63  ;;  %v461_v3 = vand.u32 4294901760, %v4254_v49  ;;  %v4301_v63 = vand.u32 4294901760, %v196_v16 }
  0x5c   : > { %3037 = vmatprep.subr.bf16.mxu1 %v5620_v53  ;;  %3181 = vmatprep.subr.bf16.mxu0 %v5620_v53  ;;  %v4296_v10 = vsub.f32 %v4221_v46, %v5681_v29  ;;  %5682 = vst [vmem:[#allocation63_spill] sm:$0xff] %v4299_v27  ;;  %v5684_v56 = vand.u32 4294901760, %v4173_v33  ;;  %v470_v45 = vand.u32 4294901760, %v4267_v23  ;;  %v4310_v44 = vand.u32 4294901760, %v195_v0 }
  0x5d   : > { %5683 = vst [vmem:[#allocation64_spill] sm:$0xff] %v4301_v63  ;;  %1859 = vmatmul.mubr.f32.gmra.mrb[6].mxu0 %v5685_v51  ;;  %v5687_v14 = vand.u32 4294901760, %v4120_v37  ;;  %v3041_v29 = vpack.c.bf16 %v925_v15, %v918_v62  ;;  %v5688_v28 = vand.u32 4294901760, %v3905_v7  ;;  %v5689_v33 = vand.u32 4294901760, %v3910_v8  ;;  %v197_v51 = vld [vmem:[%s3748_s16 + $0xa0] sm:$0xff] }
  0x5e   : > { %432 = vmatmul.mubr.f32.gmra.mrb[6].mxu1 %v5684_v56  ;;  %5686 = vst [vmem:[#allocation65_spill] sm:$0xff] %v4310_v44  ;;  %v932_v48 = vand.u32 4294901760, %v931_v18  ;;  %v939_v23 = vand.u32 4294901760, %v938_v61  ;;  %v5690_v49 = vand.u32 4294901760, %v3936_v20  ;;  %v5692_v18 = vand.u32 4294901760, %v4247_v17 }
  0x5f   : > { %441 = vmatprep.mubr.f32.mxu1 %v440_v31  ;;  %1866 = vmatprep.mubr.f32.mxu0 %v5687_v14  ;;  %v3185_v56 = vpack.c.bf16 %v5689_v33, %v5688_v28  ;;  %v5691_v31 = vand.u32 4294901760, %v3941_v21  ;;  %v5695_v33 = vand.u32 4294901760, %v4275_v50  ;;  %v4350_v28 = vand.u32 4294901760, %v198_v22  ;;  %v200_v14 = vld [vmem:[%s3748_s16 + $0xb8] sm:$0xff] }
  0x60   : > { %3039 = vmatpush1.bf16.msra.mxu1 %v3038_v52  ;;  %3183 = vmatpush1.bf16.msra.mxu0 %v3182_v39  ;;  %v945_v30 = vsub.f32 %v3936_v20, %v5690_v49  ;;  %v4332_v61 = vsub.f32 %v4247_v17, %v5692_v18  ;;  %v4338_v52 = vsub.f32 %v196_v16, %v4301_v63  ;;  %v5694_v49 = vand.u32 4294901760, %v4142_v34 }
  0x61   : > { %v952_v62 = vsub.f32 %v3941_v21, %v5691_v31  ;;  %3040 = vmatprep.subr.bf16.mxu1 %v5620_v53  ;;  %3184 = vmatprep.subr.bf16.mxu0 %v5620_v53  ;;  %v4345_v31 = vsub.f32 %v4275_v50, %v5695_v33  ;;  %v4348_v18 = vsub.f32 %v195_v0, %v4310_v44  ;;  %v4352_v39 = vand.u32 4294901760, %v197_v51  ;;  %v202_v0 = vld [vmem:[%s3748_s16 + $0xc8] sm:$0xff] }
  0x62   : > { %5693 = vst [vmem:[#allocation66_spill] sm:$0xff] %v4338_v52  ;;  %447 = vmatmul.mubr.f32.gmra.mrb[8].mxu1 %v446_v41  ;;  %1870 = vmatmul.mubr.f32.gmra.mrb[8].mxu0 %v5694_v49  ;;  %5697 = vst [vmem:[#allocation68_spill] sm:$0xff] %v4350_v28  ;;  %v5699_v16 = vand.u32 4294901760, %v4156_v57  ;;  %v3044_v41 = vpack.c.bf16 %v939_v23, %v932_v48  ;;  %v5700_v49 = vand.u32 4294901760, %v3921_v13  ;;  %v5701_v15 = vand.u32 4294901760, %v3931_v19 }
  0x63   : > { %5696 = vst [vmem:[#allocation67_spill] sm:$0xff] %v4348_v18  ;;  %5698 = vst [vmem:[#allocation69_spill] sm:$0xff] %v4352_v39  ;;  %456 = vmatprep.mubr.f32.mxu1 %v455_v12  ;;  %v5454_v33 = vand.u32 4294901760, %v3960_v35  ;;  %v946_v37 = vand.u32 4294901760, %v945_v30  ;;  %v953_v44 = vand.u32 4294901760, %v952_v62  ;;  %v5702_v12 = vand.u32 4294901760, %v3949_v24 }
  0x64   : > { %1877 = vmatprep.mubr.f32.mxu0 %v5699_v16  ;;  %v3188_v34 = vpack.c.bf16 %v5701_v15, %v5700_v49  ;;  %3042 = vmatpush1.bf16.msra.mxu1 %v3041_v29  ;;  %v5703_v48 = vand.u32 4294901760, %v3952_v25  ;;  %v491_v15 = vand.u32 4294901760, %v4332_v61  ;;  %v5704_v16 = vand.u32 4294901760, %v4299_v27 }
  0x65   : > { %3186 = vmatpush1.bf16.msra.mxu0 %v3185_v56  ;;  %v959_v57 = vsub.f32 %v3949_v24, %v5702_v12  ;;  %3043 = vmatprep.subr.bf16.mxu1 %v5620_v53  ;;  %v4378_v29 = vand.u32 4294901760, %v200_v14  ;;  %v5706_v56 = vand.u32 4294901760, %v4186_v58  ;;  %v500_v62 = vand.u32 4294901760, %v4345_v31 }
  0x66   : > { %v966_v23 = vsub.f32 %v3952_v25, %v5703_v48  ;;  %v4373_v49 = vsub.f32 %v4299_v27, %v5704_v16  ;;  %3187 = vmatprep.subr.bf16.mxu0 %v5620_v53  ;;  %462 = vmatmul.mubr.f32.gmra.mrb[10].mxu1 %v461_v3  ;;  %v4385_v12 = vsub.f32 %v198_v22, %v4350_v28  ;;  %v199_v16 = vld [vmem:[%s3748_s16 + $0xb0] sm:$0xff]  ;;  %v5709_v30 = vand.u32 4294901760, %v4196_v9 }
  0x67   : > { %5705 = vst [vmem:[#allocation70_spill] sm:$0xff] %v4378_v29  ;;  %1881 = vmatmul.mubr.f32.gmra.mrb[10].mxu0 %v5706_v56  ;;  %v4388_v48 = vsub.f32 %v197_v51, %v4352_v39  ;;  %471 = vmatprep.mubr.f32.mxu1 %v470_v45  ;;  %v973_v3 = vsub.f32 %v3960_v35, %v5454_v33  ;;  %v5710_v31 = vand.u32 4294901760, %v3963_v36  ;;  %v5711_v45 = vand.u32 4294901760, %v3936_v20 }
  0x68   : > { %5707 = vst [vmem:[#allocation71_spill] sm:$0xff] %v4385_v12  ;;  %1888 = vmatprep.mubr.f32.mxu0 %v5709_v30  ;;  %3045 = vmatpush1.bf16.msra.mxu1 %v3044_v41  ;;  %v3047_v51 = vpack.c.bf16 %v953_v44, %v946_v37  ;;  %v5712_v30 = vand.u32 4294901760, %v3941_v21  ;;  %v960_v58 = vand.u32 4294901760, %v959_v57  ;;  %v967_v39 = vand.u32 4294901760, %v966_v23 }
  0x69   : > { %5708 = vst [vmem:[#allocation72_spill] sm:$0xff] %v4388_v48  ;;  %v980_v56 = vsub.f32 %v3963_v36, %v5710_v31  ;;  %3189 = vmatpush1.bf16.msra.mxu0 %v3188_v34  ;;  %v506_v33 = vand.u32 4294901760, %v4373_v49  ;;  %v5713_v31 = vand.u32 4294901760, %v4338_v52  ;;  %v4413_v41 = vsub.f32 %v200_v14, %v4378_v29  ;;  %3046 = vmatprep.subr.bf16.mxu1 %v5620_v53 }
  0x6a   : > { %v3191_v9 = vpack.c.bf16 %v5712_v30, %v5711_v45  ;;  %v4415_v34 = vand.u32 4294901760, %v199_v16  ;;  %3190 = vmatprep.subr.bf16.mxu0 %v5620_v53  ;;  %v5716_v37 = vand.u32 4294901760, %v4272_v4  ;;  %v5717_v57 = vand.u32 4294901760, %v4199_v32  ;;  %v201_v30 = vld [vmem:[%s3748_s16 + $0xc0] sm:$0xff] }
  0x6b   : > { %v4410_v22 = vsub.f32 %v4338_v52, %v5713_v31  ;;  %5714 = vst [vmem:[#allocation73_spill] sm:$0xff] %v4413_v41  ;;  %v5718_v44 = vand.u32 4294901760, %v4348_v18  ;;  %v4430_v45 = vand.u32 4294901760, %v202_v0  ;;  %v5720_v31 = vand.u32 4294901760, %v4296_v10 }
  0x6c   : > { %5715 = vst [vmem:[#allocation74_spill] sm:$0xff] %v4415_v34  ;;  %477 = vmatmul.mubr.f32.gmra.mrb[12].mxu1 %v5716_v37  ;;  %1892 = vmatmul.mubr.f32.gmra.mrb[12].mxu0 %v5717_v57  ;;  %v5721_v4 = vand.u32 4294901760, %v4221_v46  ;;  %v204_v37 = vld [vmem:[%s3748_s16 + $0xd8] sm:$0xff]  ;;  %v974_v57 = vand.u32 4294901760, %v973_v3  ;;  %v981_v61 = vand.u32 4294901760, %v980_v56  ;;  %v5722_v32 = vand.u32 4294901760, %v3965_v40 }
  0x6d   : > { %v4426_v23 = vsub.f32 %v4348_v18, %v5718_v44  ;;  %5719 = vst [vmem:[#allocation75_spill] sm:$0xff] %v4430_v45  ;;  %486 = vmatprep.mubr.f32.mxu1 %v5720_v31  ;;  %v5723_v14 = vand.u32 4294901760, %v3970_v42  ;;  %3048 = vmatpush1.bf16.msra.mxu1 %v3047_v51  ;;  %v3050_v29 = vpack.c.bf16 %v967_v39, %v960_v58  ;;  %v5724_v10 = vand.u32 4294901760, %v3949_v24  ;;  %v203_v56 = vld [vmem:[%s3748_s16 + $0xd0] sm:$0xff] }
  0x6e   : > { %1899 = vmatprep.mubr.f32.mxu0 %v5721_v4  ;;  %v987_v44 = vsub.f32 %v3965_v40, %v5722_v32  ;;  %3192 = vmatpush1.bf16.msra.mxu0 %v3191_v9  ;;  %v5725_v31 = vand.u32 4294901760, %v3952_v25  ;;  %v515_v32 = vand.u32 4294901760, %v4410_v22  ;;  %v4455_v9 = vand.u32 4294901760, %v201_v30 }
  0x6f   : > { %v994_v49 = vsub.f32 %v3970_v42, %v5723_v14  ;;  %v4453_v14 = vsub.f32 %v199_v16, %v4415_v34  ;;  %3049 = vmatprep.subr.bf16.mxu1 %v5620_v53  ;;  %3193 = vmatprep.subr.bf16.mxu0 %v5620_v53  ;;  %v5728_v58 = vand.u32 4294901760, %v4247_v17  ;;  %v5729_v39 = vand.u32 4294901760, %v4385_v12 }
  0x70   : > { %v3194_v46 = vpack.c.bf16 %v5725_v31, %v5724_v10  ;;  %5727 = vst [vmem:[#allocation77_spill] sm:$0xff] %v4455_v9  ;;  %492 = vmatmul.mubr.f32.gmra.mrb[14].mxu1 %v491_v15  ;;  %v5730_v22 = vand.u32 4294901760, %v4388_v48  ;;  %v4470_v16 = vsub.f32 %v202_v0, %v4430_v45  ;;  %v4472_v31 = vand.u32 4294901760, %v204_v37 }
  0x71   : > { %5726 = vst [vmem:[#allocation76_spill] sm:$0xff] %v4453_v14  ;;  %1903 = vmatmul.mubr.f32.gmra.mrb[14].mxu0 %v5728_v58  ;;  %v529_v51 = vsub.f32 %v4385_v12, %v5729_v39  ;;  %501 = vmatprep.mubr.f32.mxu1 %v500_v62  ;;  %v5733_v15 = vand.u32 4294901760, %v4275_v50  ;;  %v206_v58 = vld [vmem:[%s3748_s16 + $0xe8] sm:$0xff]  ;;  %v3053_v3 = vpack.c.bf16 %v981_v61, %v974_v57  ;;  %v5734_v4 = vand.u32 4294901760, %v3960_v35  ;;  %v208_v61 = vld [vmem:[%s3748_s16 + $0xf8] sm:$0xff] }
  0x72   : > { %v4467_v10 = vsub.f32 %v4388_v48, %v5730_v22  ;;  %5731 = vst [vmem:[#allocation78_spill] sm:$0xff] %v4470_v16  ;;  %5732 = vst [vmem:[#allocation79_spill] sm:$0xff] %v4472_v31  ;;  %v5735_v39 = vand.u32 4294901760, %v3963_v36  ;;  %v988_v34 = vand.u32 4294901760, %v987_v44  ;;  %v995_v22 = vand.u32 4294901760, %v994_v49  ;;  %3051 = vmatpush1.bf16.msra.mxu1 %v3050_v29  ;;  %3195 = vmatpush1.bf16.msra.mxu0 %v3194_v46 }
  0x73   : > { %1910 = vmatprep.mubr.f32.mxu0 %v5733_v15  ;;  %v5736_v0 = vand.u32 4294901760, %v3973_v43  ;;  %v5737_v62 = vand.u32 4294901760, %v3978_v47  ;;  %v521_v50 = vand.u32 4294901760, %v4426_v23  ;;  %v5738_v44 = vand.u32 4294901760, %v4413_v41  ;;  %3052 = vmatprep.subr.bf16.mxu1 %v5620_v53 }
  0x74   : > { %v3197_v17 = vpack.c.bf16 %v5735_v39, %v5734_v4  ;;  %v4498_v49 = vsub.f32 %v201_v30, %v4455_v9  ;;  %3196 = vmatprep.subr.bf16.mxu0 %v5620_v53  ;;  %507 = vmatmul.mubr.f32.gmra.mrb[16].mxu1 %v506_v33  ;;  %v5740_v4 = vand.u32 4294901760, %v4299_v27  ;;  %v530_v23 = vand.u32 4294901760, %v529_v51 }
  0x75   : > { %v1001_v45 = vsub.f32 %v3973_v43, %v5736_v0  ;;  %v1008_v15 = vsub.f32 %v3978_v47, %v5737_v62  ;;  %v4494_v29 = vsub.f32 %v4413_v41, %v5738_v44  ;;  %v4505_v39 = vsub.f32 %v204_v37, %v4472_v31  ;;  %v205_v44 = vld [vmem:[%s3748_s16 + $0xe0] sm:$0xff]  ;;  %516 = vmatprep.mubr.f32.mxu1 %v515_v32 }
  0x76   : > { %5739 = vst [vmem:[#allocation80_spill] sm:$0xff] %v4498_v49  ;;  %1914 = vmatmul.mubr.f32.gmra.mrb[16].mxu0 %v5740_v4  ;;  %v4507_v0 = vand.u32 4294901760, %v203_v56  ;;  %v4509_v62 = vand.u32 4294901760, %v206_v58  ;;  %v5744_v30 = vand.u32 4294901760, %v4338_v52  ;;  %v536_v46 = vand.u32 4294901760, %v4467_v10  ;;  %3054 = vmatpush1.bf16.msra.mxu1 %v3053_v3 }
  0x77   : > { %5741 = vst [vmem:[#allocation81_spill] sm:$0xff] %v4505_v39  ;;  %v5473_v33 = vand.u32 4294901760, %v4470_v16  ;;  %v3056_v57 = vpack.c.bf16 %v995_v22, %v988_v34  ;;  %v5745_v4 = vand.u32 4294901760, %v3965_v40  ;;  %v5746_v51 = vand.u32 4294901760, %v3970_v42  ;;  %3198 = vmatpush1.bf16.msra.mxu0 %v3197_v17  ;;  %3055 = vmatprep.subr.bf16.mxu1 %v5620_v53 }
  0x78   : > { %5742 = vst [vmem:[#allocation82_spill] sm:$0xff] %v4507_v0  ;;  %5743 = vst [vmem:[#allocation83_spill] sm:$0xff] %v4509_v62  ;;  %1921 = vmatprep.mubr.f32.mxu0 %v5744_v30  ;;  %v1002_v27 = vand.u32 4294901760, %v1001_v45  ;;  %v1009_v31 = vand.u32 4294901760, %v1008_v15  ;;  %v5747_v32 = vand.u32 4294901760, %v3990_v54  ;;  %v5748_v30 = vand.u32 4294901760, %v3992_v55  ;;  %3199 = vmatprep.subr.bf16.mxu0 %v5620_v53 }
  0x79   : > { %v3200_v37 = vpack.c.bf16 %v5746_v51, %v5745_v4  ;;  %v545_v34 = vand.u32 4294901760, %v4494_v29  ;;  %v5749_v22 = vand.u32 4294901760, %v4453_v14  ;;  %v4532_v17 = vand.u32 4294901760, %v205_v44  ;;  %522 = vmatmul.mubr.f32.gmra.mrb[18].mxu1 %v521_v50 }
  0x7a   : > { %v1015_v52 = vsub.f32 %v3990_v54, %v5747_v32  ;;  %v1022_v10 = vsub.f32 %v3992_v55, %v5748_v30  ;;  %v5751_v45 = vand.u32 4294901760, %v4348_v18  ;;  %v4540_v29 = vsub.f32 %v203_v56, %v4507_v0  ;;  %531 = vmatprep.mubr.f32.mxu1 %v530_v23  ;;  %v209_v32 = vld [vmem:[%s3748_s16 + $0x100] sm:$0xff]  ;;  %3057 = vmatpush1.bf16.msra.mxu1 %v3056_v57 }
  0x7b   : > { %v550_v4 = vsub.f32 %v4453_v14, %v5749_v22  ;;  %5750 = vst [vmem:[#allocation84_spill] sm:$0xff] %v4532_v17  ;;  %v4543_v51 = vsub.f32 %v206_v58, %v4509_v62  ;;  %v5754_v30 = vand.u32 4294901760, %v4385_v12  ;;  %v559_v50 = vsub.f32 %v4470_v16, %v5473_v33  ;;  %v5758_v58 = vld [vmem:[#allocation30_spill] sm:$0xff]  ;;  %v210_v62 = vld [vmem:[%s3748_s16 + $0x108] sm:$0xff]  ;;  %3201 = vmatpush1.bf16.msra.mxu0 %v3200_v37  ;;  %v212_v37 = vld [vmem:[%s3748_s16 + $0x118] sm:$0xff] }
  0x7c   : > { %1925 = vmatmul.mubr.f32.gmra.mrb[18].mxu0 %v5751_v45  ;;  %5752 = vst [vmem:[#allocation85_spill] sm:$0xff] %v4540_v29  ;;  %v4551_v22 = vand.u32 4294901760, %v208_v61  ;;  %v207_v45 = vld [vmem:[%s3748_s16 + $0xf0] sm:$0xff]  ;;  %v5756_v15 = vand.u32 4294901760, %v3973_v43  ;;  %v5757_v56 = vand.u32 4294901760, %v3978_v47  ;;  %v1035_v18 = vand.u32 4294901760, %v5758_v58  ;;  %3058 = vmatprep.subr.bf16.mxu1 %v5620_v53 }
  0x7d   : > { %5753 = vst [vmem:[#allocation86_spill] sm:$0xff] %v4543_v51  ;;  %1932 = vmatprep.mubr.f32.mxu0 %v5754_v30  ;;  %v3059_v23 = vpack.c.bf16 %v1009_v31, %v1002_v27  ;;  %v1016_v30 = vand.u32 4294901760, %v1015_v52  ;;  %v1023_v12 = vand.u32 4294901760, %v1022_v10  ;;  %v5759_v33 = vand.u32 4294901760, %v4001_v60  ;;  %3202 = vmatprep.subr.bf16.mxu0 %v5620_v53 }
  0x7e   : > { %5755 = vst [vmem:[#allocation87_spill] sm:$0xff] %v4551_v22  ;;  %v3203_v3 = vpack.c.bf16 %v5757_v56, %v5756_v15  ;;  %v551_v9 = vand.u32 4294901760, %v550_v4  ;;  %v5760_v28 = vand.u32 4294901760, %v4498_v49  ;;  %v4568_v15 = vsub.f32 %v205_v44, %v4532_v17  ;;  %537 = vmatmul.mubr.f32.gmra.mrb[20].mxu1 %v536_v46 }
  0x7f   : > { %v1029_v0 = vsub.f32 %v4001_v60, %v5759_v33  ;;  %v1036_v27 = vsub.f32 %v5758_v58, %v1035_v18  ;;  %v5762_v52 = vand.u32 4294901760, %v4388_v48  ;;  %v5763_v31 = vand.u32 4294901760, %v4505_v39  ;;  %546 = vmatprep.mubr.f32.mxu1 %v545_v34  ;;  %3060 = vmatpush1.bf16.msra.mxu1 %v3059_v23 }
  0x80   : > { %v565_v63 = vsub.f32 %v4498_v49, %v5760_v28  ;;  %5761 = vst [vmem:[#allocation30_spill] sm:$0xff] %v4568_v15  ;;  %v4580_v44 = vand.u32 4294901760, %v207_v45  ;;  %v5765_v10 = vand.u32 4294901760, %v4413_v41  ;;  %v560_v46 = vand.u32 4294901760, %v559_v50  ;;  %3204 = vmatpush1.bf16.msra.mxu0 %v3203_v3  ;;  %3061 = vmatprep.subr.bf16.mxu1 %v5620_v53  ;;  %v5772_v3 = vld [vmem:[#allocation31_spill] sm:$0xff] }
  0x81   : > { %1936 = vmatmul.mubr.f32.gmra.mrb[20].mxu0 %v5762_v52  ;;  %v574_v57 = vsub.f32 %v4505_v39, %v5763_v31  ;;  %v4586_v4 = vsub.f32 %v208_v61, %v4551_v22  ;;  %v4588_v56 = vand.u32 4294901760, %v210_v62  ;;  %v4590_v52 = vand.u32 4294901760, %v209_v32  ;;  %3205 = vmatprep.subr.bf16.mxu0 %v5620_v53 }
  0x82   : > { %5764 = vst [vmem:[#allocation88_spill] sm:$0xff] %v4580_v44  ;;  %1943 = vmatprep.mubr.f32.mxu0 %v5765_v10  ;;  %v3062_v31 = vpack.c.bf16 %v1023_v12, %v1016_v30  ;;  %v5769_v28 = vand.u32 4294901760, %v3990_v54  ;;  %v5770_v33 = vand.u32 4294901760, %v3992_v55  ;;  %v1030_v34 = vand.u32 4294901760, %v1029_v0  ;;  %v211_v10 = vld [vmem:[%s3748_s16 + $0x110] sm:$0xff]  ;;  %552 = vmatmul.mubr.f32.gmra.mrb[22].mxu1 %v551_v9 }
  0x83   : > { %5766 = vst [vmem:[#allocation89_spill] sm:$0xff] %v4586_v4  ;;  %5767 = vst [vmem:[#allocation90_spill] sm:$0xff] %v4588_v56  ;;  %v1037_v17 = vand.u32 4294901760, %v1036_v27  ;;  %v566_v41 = vand.u32 4294901760, %v565_v63  ;;  %v4597_v61 = vand.u32 4294901760, %v212_v37  ;;  %v1042_v12 = vand.u32 4294901760, %v5772_v3  ;;  %561 = vmatprep.mubr.f32.mxu1 %v560_v46 }
  0x84   : > { %5768 = vst [vmem:[#allocation91_spill] sm:$0xff] %v4590_v52  ;;  %v3206_v48 = vpack.c.bf16 %v5770_v33, %v5769_v28  ;;  %v5773_v23 = vand.u32 4294901760, %v4453_v14  ;;  %v575_v30 = vand.u32 4294901760, %v574_v57  ;;  %v5774_v0 = vand.u32 4294901760, %v4540_v29  ;;  %v214_v57 = vld [vmem:[%s3748_s16 + $0x128] sm:$0xff]  ;;  %3063 = vmatpush1.bf16.msra.mxu1 %v3062_v31 }
  0x85   : > { %5771 = vst [vmem:[#allocation92_spill] sm:$0xff] %v4597_v61  ;;  %v5775_v27 = vand.u32 4294901760, %v4543_v51  ;;  %v4612_v28 = vsub.f32 %v207_v45, %v4580_v44  ;;  %v5777_v50 = vand.u32 4294901760, %v4470_v16  ;;  %v1043_v14 = vsub.f32 %v5772_v3, %v1042_v12  ;;  %3064 = vmatprep.subr.bf16.mxu1 %v5620_v53 }
  0x86   : > { %1947 = vmatmul.mubr.f32.gmra.mrb[22].mxu0 %v5773_v23  ;;  %v580_v63 = vsub.f32 %v4540_v29, %v5774_v0  ;;  %v4618_v23 = vsub.f32 %v210_v62, %v4588_v56  ;;  %v5779_v0 = vld [vmem:[#allocation36_spill] sm:$0xff]  ;;  %v4624_v26 = vsub.f32 %v209_v32, %v4590_v52  ;;  %v3065_v45 = vpack.c.bf16 %v1037_v17, %v1030_v34  ;;  %v5789_v52 = vld [vmem:[#allocation42_spill] sm:$0xff] }
  0x87   : > { %v589_v33 = vsub.f32 %v4543_v51, %v5775_v27  ;;  %5776 = vst [vmem:[#allocation31_spill] sm:$0xff] %v4612_v28  ;;  %1954 = vmatprep.mubr.f32.mxu0 %v5777_v50  ;;  %v1049_v22 = vand.u32 4294901760, %v5779_v0  ;;  %v4626_v27 = vand.u32 4294901760, %v211_v10  ;;  %3207 = vmatpush1.bf16.msra.mxu0 %v3206_v48  ;;  %v5782_v46 = vand.u32 4294901760, %v4001_v60 }
  0x88   : > { %5778 = vst [vmem:[#allocation93_spill] sm:$0xff] %v4618_v23  ;;  %5780 = vst [vmem:[#allocation36_spill] sm:$0xff] %v4624_v26  ;;  %v5783_v9 = vand.u32 4294901760, %v4568_v15  ;;  %v4634_v16 = vsub.f32 %v212_v37, %v4597_v61  ;;  %3208 = vmatprep.subr.bf16.mxu0 %v5620_v53  ;;  %v1044_v32 = vand.u32 4294901760, %v1043_v14  ;;  %567 = vmatmul.mubr.f32.gmra.mrb[24].mxu1 %v566_v41  ;;  %v5785_v48 = vand.u32 4294901760, %v4498_v49  ;;  %v213_v61 = vld [vmem:[%s3748_s16 + $0x120] sm:$0xff] }
  0x89   : > { %5781 = vst [vmem:[#allocation94_spill] sm:$0xff] %v4626_v27  ;;  %v3209_v50 = vpack.c.bf16 %v1035_v18, %v5782_v46  ;;  %v1050_v31 = vsub.f32 %v5779_v0, %v1049_v22  ;;  %v581_v18 = vand.u32 4294901760, %v580_v63  ;;  %v590_v17 = vand.u32 4294901760, %v589_v33  ;;  %576 = vmatprep.mubr.f32.mxu1 %v575_v30  ;;  %v5790_v63 = vld [vmem:[#allocation27_spill] sm:$0xff]  ;;  %3066 = vmatpush1.bf16.msra.mxu1 %v3065_v45 }
  0x8a   : > { %v595_v62 = vsub.f32 %v4568_v15, %v5783_v9  ;;  %5784 = vst [vmem:[#allocation95_spill] sm:$0xff] %v4634_v16  ;;  %1958 = vmatmul.mubr.f32.gmra.mrb[24].mxu0 %v5785_v48  ;;  %v4642_v9 = vand.u32 4294901760, %v214_v57  ;;  %v5787_v37 = vand.u32 4294901760, %v4505_v39  ;;  %v5788_v46 = vand.u32 4294901760, %v4586_v4  ;;  %3067 = vmatprep.subr.bf16.mxu1 %v5620_v53 }
  0x8b   : > { %v1051_v49 = vand.u32 4294901760, %v1050_v31  ;;  %v1056_v48 = vand.u32 4294901760, %v5789_v52  ;;  %v5791_v33 = vand.u32 4294901760, %v5790_v63  ;;  %v4659_v39 = vsub.f32 %v211_v10, %v4626_v27  ;;  %3210 = vmatpush1.bf16.msra.mxu0 %v3209_v50  ;;  %v215_v50 = vld [vmem:[%s3748_s16 + $0x130] sm:$0xff] }
  0x8c   : > { %5786 = vst [vmem:[#allocation96_spill] sm:$0xff] %v4642_v9  ;;  %1965 = vmatprep.mubr.f32.mxu0 %v5787_v37  ;;  %v604_v14 = vsub.f32 %v4586_v4, %v5788_v46  ;;  %v216_v37 = vld [vmem:[%s3748_s16 + $0x138] sm:$0xff]  ;;  %v3212_v46 = vpack.c.bf16 %v1049_v22, %v1042_v12  ;;  %v596_v41 = vand.u32 4294901760, %v595_v62  ;;  %3211 = vmatprep.subr.bf16.mxu0 %v5620_v53  ;;  %v5793_v10 = vand.u32 4294901760, %v4540_v29 }
  0x8d   : > { %v4655_v34 = vsub.f32 %v5790_v63, %v5791_v33  ;;  %5792 = vst [vmem:[#allocation42_spill] sm:$0xff] %v4659_v39  ;;  %v3068_v56 = vpack.c.bf16 %v1051_v49, %v1044_v32  ;;  %v1057_v63 = vsub.f32 %v5789_v52, %v1056_v48  ;;  %582 = vmatmul.mubr.f32.gmra.mrb[26].mxu1 %v581_v18  ;;  %v5794_v33 = vand.u32 4294901760, %v4612_v28  ;;  %v5797_v49 = vld [vmem:[#allocation43_spill] sm:$0xff]  ;;  %v5798_v32 = vld [vmem:[#allocation28_spill] sm:$0xff] }
  0x8e   : > { %1969 = vmatmul.mubr.f32.gmra.mrb[26].mxu0 %v5793_v10  ;;  %v4672_v22 = vsub.f32 %v214_v57, %v4642_v9  ;;  %v4674_v12 = vand.u32 4294901760, %v213_v61  ;;  %v1063_v62 = vand.u32 4294901760, %v5797_v49  ;;  %v5799_v31 = vand.u32 4294901760, %v5798_v32  ;;  %591 = vmatprep.mubr.f32.mxu1 %v590_v17 }
  0x8f   : > { %v610_v45 = vsub.f32 %v4612_v28, %v5794_v33  ;;  %v5800_v18 = vand.u32 4294901760, %v4543_v51  ;;  %v605_v10 = vand.u32 4294901760, %v604_v14  ;;  %v5801_v33 = vand.u32 4294901760, %v4618_v23  ;;  %3069 = vmatpush1.bf16.msra.mxu1 %v3068_v56  ;;  %3213 = vmatpush1.bf16.msra.mxu0 %v3212_v46  ;;  %v217_v51 = vld [vmem:[%s3748_s16 + $0x140] sm:$0xff]  ;;  %v220_v46 = vld [vmem:[%s3748_s16 + $0x158] sm:$0xff] }
  0x90   : > { %5795 = vst [vmem:[#allocation27_spill] sm:$0xff] %v4672_v22  ;;  %5796 = vst [vmem:[#allocation97_spill] sm:$0xff] %v4674_v12  ;;  %v4681_v30 = vsub.f32 %v5798_v32, %v5799_v31  ;;  %v4688_v29 = vand.u32 4294901760, %v216_v37  ;;  %v5803_v9 = vand.u32 4294901760, %v4624_v26  ;;  %v218_v31 = vld [vmem:[%s3748_s16 + $0x148] sm:$0xff]  ;;  %v1058_v17 = vand.u32 4294901760, %v1057_v63  ;;  %3070 = vmatprep.subr.bf16.mxu1 %v5620_v53  ;;  %3214 = vmatprep.subr.bf16.mxu0 %v5620_v53 }
  0x91   : > { %1976 = vmatprep.mubr.f32.mxu0 %v5800_v18  ;;  %v619_v57 = vsub.f32 %v4618_v23, %v5801_v33  ;;  %v1064_v32 = vsub.f32 %v5797_v49, %v1063_v62  ;;  %v5804_v14 = vand.u32 4294901760, %v4634_v16  ;;  %v4699_v33 = vand.u32 4294901760, %v215_v50  ;;  %597 = vmatmul.mubr.f32.gmra.mrb[28].mxu1 %v596_v41 }
  0x92   : > { %5802 = vst [vmem:[#allocation43_spill] sm:$0xff] %v4688_v29  ;;  %v625_v27 = vsub.f32 %v4624_v26, %v5803_v9  ;;  %v3215_v9 = vpack.c.bf16 %v1063_v62, %v1056_v48  ;;  %v5806_v44 = vand.u32 4294901760, %v4568_v15  ;;  %v611_v56 = vand.u32 4294901760, %v610_v45  ;;  %606 = vmatprep.mubr.f32.mxu1 %v605_v10 }
  0x93   : > { %v634_v18 = vsub.f32 %v4634_v16, %v5804_v14  ;;  %5805 = vst [vmem:[#allocation28_spill] sm:$0xff] %v4699_v33  ;;  %v4707_v63 = vsub.f32 %v213_v61, %v4674_v12  ;;  %v1065_v14 = vand.u32 4294901760, %v1064_v32  ;;  %v5808_v5 = vand.u32 4294901760, %v4586_v4 }
  0x94   : > { %1980 = vmatmul.mubr.f32.gmra.mrb[28].mxu0 %v5806_v44  ;;  %v620_v59 = vand.u32 4294901760, %v619_v57  ;;  %v4713_v48 = vsub.f32 %v216_v37, %v4688_v29  ;;  %v4715_v41 = vand.u32 4294901760, %v218_v31  ;;  %v1070_v44 = vand.u32 4294901760, %v4655_v34 }
  0x95   : > { %5807 = vst [vmem:[#allocation98_spill] sm:$0xff] %v4707_v63  ;;  %1987 = vmatprep.mubr.f32.mxu0 %v5808_v5  ;;  %v626_v45 = vand.u32 4294901760, %v625_v27  ;;  %v5810_v62 = vand.u32 4294901760, %v4659_v39  ;;  %v3071_v15 = vpack.c.bf16 %v1065_v14, %v1058_v17  ;;  %3216 = vmatpush1.bf16.msra.mxu0 %v3215_v9  ;;  %v1077_v10 = vand.u32 4294901760, %v4681_v30 }
  0x96   : > { %5809 = vst [vmem:[#allocation99_spill] sm:$0xff] %v4713_v48  ;;  %v635_v32 = vand.u32 4294901760, %v634_v18  ;;  %v4724_v5 = vsub.f32 %v215_v50, %v4699_v33  ;;  %v4726_v37 = vand.u32 4294901760, %v217_v51  ;;  %v1071_v57 = vsub.f32 %v4655_v34, %v1070_v44  ;;  %3217 = vmatprep.subr.bf16.mxu0 %v5620_v53  ;;  %612 = vmatmul.mubr.f32.gmra.mrb[30].mxu1 %v611_v56  ;;  %v222_v33 = vld [vmem:[%s3748_s16 + $0x168] sm:$0xff] }
  0x97   : > { %v640_v61 = vsub.f32 %v4659_v39, %v5810_v62  ;;  %v5812_v27 = vand.u32 4294901760, %v4612_v28  ;;  %v5813_v17 = vand.u32 4294901760, %v4672_v22  ;;  %v654_v18 = vand.u32 4294901760, %v4707_v63  ;;  %621 = vmatprep.mubr.f32.mxu1 %v620_v59  ;;  %3072 = vmatpush1.bf16.msra.mxu1 %v3071_v15 }
  0x98   : > { %5811 = vst [vmem:[#allocation100_spill] sm:$0xff] %v4724_v5  ;;  %v1078_v50 = vsub.f32 %v4681_v30, %v1077_v10  ;;  %v3218_v14 = vpack.c.bf16 %v1077_v10, %v1070_v44  ;;  %v5814_v62 = vand.u32 4294901760, %v4618_v23  ;;  %v663_v4 = vand.u32 4294901760, %v4713_v48  ;;  %3073 = vmatprep.subr.bf16.mxu1 %v5620_v53 }
  0x99   : > { %1991 = vmatmul.mubr.f32.gmra.mrb[30].mxu0 %v5812_v27  ;;  %v649_v9 = vsub.f32 %v4672_v22, %v5813_v17  ;;  %v4741_v56 = vsub.f32 %v218_v31, %v4715_v41  ;;  %v4743_v28 = vand.u32 4294901760, %v220_v46  ;;  %v219_v27 = vld [vmem:[%s3748_s16 + $0x150] sm:$0xff]  ;;  %v1072_v17 = vand.u32 4294901760, %v1071_v57 }
  0x9a   : > { %1998 = vmatprep.mubr.f32.mxu0 %v5814_v62  ;;  %v1079_v29 = vand.u32 4294901760, %v1078_v50  ;;  %3219 = vmatpush1.bf16.msra.mxu0 %v3218_v14  ;;  %v641_v12 = vand.u32 4294901760, %v640_v61  ;;  %v669_v59 = vand.u32 4294901760, %v4724_v5  ;;  %v4749_v44 = vsub.f32 %v217_v51, %v4726_v37  ;;  %v221_v61 = vld [vmem:[%s3748_s16 + $0x160] sm:$0xff] }
  0x9b   : > { %5815 = vst [vmem:[#allocation101_spill] sm:$0xff] %v4741_v56  ;;  %3220 = vmatprep.subr.bf16.mxu0 %v5620_v53  ;;  %627 = vmatmul.mubr.f32.gmra.mrb[32].mxu1 %v626_v45  ;;  %v5817_v31 = vand.u32 4294901760, %v4624_v26  ;;  %v655_v10 = vsub.f32 %v4707_v63, %v654_v18  ;;  %v4756_v15 = vand.u32 4294901760, %v219_v27  ;;  %v4758_v57 = vand.u32 4294901760, %v222_v33 }
  0x9c   : > { %5816 = vst [vmem:[#allocation102_spill] sm:$0xff] %v4749_v44  ;;  %v3074_v50 = vpack.c.bf16 %v1079_v29, %v1072_v17  ;;  %636 = vmatprep.mubr.f32.mxu1 %v635_v32  ;;  %v5820_v51 = vand.u32 4294901760, %v4634_v16  ;;  %v650_v14 = vand.u32 4294901760, %v649_v9  ;;  %v664_v62 = vsub.f32 %v4713_v48, %v663_v4 }
  0x9d   : > { %2002 = vmatmul.mubr.f32.gmra.mrb[32].mxu0 %v5817_v31  ;;  %5818 = vst [vmem:[#allocation103_spill] sm:$0xff] %v4756_v15  ;;  %5819 = vst [vmem:[#allocation104_spill] sm:$0xff] %v4758_v57  ;;  %v678_v45 = vand.u32 4294901760, %v4741_v56  ;;  %v4766_v26 = vsub.f32 %v220_v46, %v4743_v28  ;;  %v224_v31 = vld [vmem:[%s3748_s16 + $0x178] sm:$0xff]  ;;  %v670_v29 = vsub.f32 %v4724_v5, %v669_v59  ;;  %v684_v32 = vand.u32 4294901760, %v4749_v44 }
  0x9e   : > { %2009 = vmatprep.mubr.f32.mxu0 %v5820_v51  ;;  %3075 = vmatpush1.bf16.msra.mxu1 %v3074_v50  ;;  %v4773_v17 = vand.u32 4294901760, %v221_v61  ;;  %v5823_v9 = vand.u32 4294901760, %v4659_v39  ;;  %v656_v46 = vand.u32 4294901760, %v655_v10  ;;  %v4779_v50 = vsub.f32 %v219_v27, %v4756_v15  ;;  %v226_v10 = vld [vmem:[%s3748_s16 + $0x188] sm:$0xff] }
  0x9f   : > { %5821 = vst [vmem:[#allocation105_spill] sm:$0xff] %v4766_v26  ;;  %3076 = vmatprep.subr.bf16.mxu1 %v5620_v53  ;;  %642 = vmatmul.mubr.f32.gmra.mrb[34].mxu1 %v641_v12  ;;  %v4782_v51 = vsub.f32 %v222_v33, %v4758_v57  ;;  %v5826_v63 = vand.u32 4294901760, %v4672_v22  ;;  %v665_v5 = vand.u32 4294901760, %v664_v62  ;;  %v679_v48 = vsub.f32 %v4741_v56, %v678_v45  ;;  %v225_v56 = vld [vmem:[%s3748_s16 + $0x180] sm:$0xff] }
  0xa0   : > { %5822 = vst [vmem:[#allocation106_spill] sm:$0xff] %v4773_v17  ;;  %5824 = vst [vmem:[#allocation107_spill] sm:$0xff] %v4779_v50  ;;  %651 = vmatprep.mubr.f32.mxu1 %v650_v14  ;;  %v693_v12 = vand.u32 4294901760, %v4766_v26  ;;  %v4788_v16 = vand.u32 4294901760, %v224_v31  ;;  %v671_v39 = vand.u32 4294901760, %v670_v29  ;;  %v685_v27 = vsub.f32 %v4749_v44, %v684_v32 }
  0xa1   : > { %2013 = vmatmul.mubr.f32.gmra.mrb[34].mxu0 %v5823_v9  ;;  %5825 = vst [vmem:[#allocation108_spill] sm:$0xff] %v4782_v51  ;;  %v223_v9 = vld [vmem:[%s3748_s16 + $0x170] sm:$0xff]  ;;  %v4794_v33 = vsub.f32 %v221_v61, %v4773_v17  ;;  %v708_v14 = vand.u32 4294901760, %v4782_v51  ;;  %v680_v29 = vand.u32 4294901760, %v679_v48  ;;  %v4811_v17 = vand.u32 4294901760, %v225_v56 }
  0xa2   : > { %2020 = vmatprep.mubr.f32.mxu0 %v5826_v63  ;;  %5827 = vst [vmem:[#allocation109_spill] sm:$0xff] %v4788_v16  ;;  %v699_v63 = vand.u32 4294901760, %v4779_v50  ;;  %v4798_v62 = vand.u32 4294901760, %v223_v9  ;;  %v694_v44 = vsub.f32 %v4766_v26, %v693_v12  ;;  %v4805_v61 = vsub.f32 %v224_v31, %v4788_v16  ;;  %v227_v31 = vld [vmem:[%s3748_s16 + $0x190] sm:$0xff] }
  0xa3   : > { %5828 = vst [vmem:[#allocation110_spill] sm:$0xff] %v4794_v33  ;;  %657 = vmatmul.mubr.f32.gmra.mrb[36].mxu1 %v656_v46  ;;  %v228_v46 = vld [vmem:[%s3748_s16 + $0x198] sm:$0xff]  ;;  %v714_v23 = vand.u32 4294901760, %v4794_v33  ;;  %5831 = vst [vmem:[#allocation113_spill] sm:$0xff] %v4811_v17  ;;  %v686_v22 = vand.u32 4294901760, %v685_v27  ;;  %v4828_v27 = vsub.f32 %v225_v56, %v4811_v17 }
  0xa4   : > { %666 = vmatprep.mubr.f32.mxu1 %v665_v5  ;;  %5829 = vst [vmem:[#allocation111_spill] sm:$0xff] %v4805_v61  ;;  %v700_v5 = vsub.f32 %v4779_v50, %v699_v63  ;;  %v4816_v48 = vsub.f32 %v223_v9, %v4798_v62  ;;  %v695_v26 = vand.u32 4294901760, %v694_v44  ;;  %v723_v16 = vand.u32 4294901760, %v4805_v61 }
  0xa5   : > { %2024 = vmatmul.mubr.f32.gmra.mrb[36].mxu0 %v654_v18  ;;  %v4807_v18 = vand.u32 4294901760, %v226_v10  ;;  %v4823_v15 = vand.u32 4294901760, %v228_v46  ;;  %5835 = vst [vmem:[#allocation117_spill] sm:$0xff] %v4828_v27  ;;  %v4830_v9 = vand.u32 4294901760, %v227_v31 }
  0xa6   : > { %2031 = vmatprep.mubr.f32.mxu0 %v663_v4  ;;  %v709_v4 = vsub.f32 %v4782_v51, %v708_v14  ;;  %5832 = vst [vmem:[#allocation114_spill] sm:$0xff] %v4816_v48  ;;  %v701_v44 = vand.u32 4294901760, %v700_v5  ;;  %v744_v5 = vand.u32 4294901760, %v4828_v27 }
  0xa7   : > { %5830 = vst [vmem:[#allocation112_spill] sm:$0xff] %v4807_v18  ;;  %672 = vmatmul.mubr.f32.gmra.mrb[38].mxu1 %v671_v39  ;;  %v4821_v57 = vsub.f32 %v226_v10, %v4807_v18  ;;  %5834 = vst [vmem:[#allocation116_spill] sm:$0xff] %v4823_v15  ;;  %v230_v39 = vld [vmem:[%s3748_s16 + $0x1a8] sm:$0xff]  ;;  %v4838_v56 = vsub.f32 %v228_v46, %v4823_v15  ;;  %v231_v46 = vld [vmem:[%s3748_s16 + $0x1b0] sm:$0xff] }
  0xa8   : > { %681 = vmatprep.mubr.f32.mxu1 %v680_v29  ;;  %5836 = vst [vmem:[#allocation118_spill] sm:$0xff] %v4830_v9  ;;  %v729_v29 = vand.u32 4294901760, %v4816_v48  ;;  %v4840_v50 = vand.u32 4294901760, %v230_v39 }
  0xa9   : > { %2035 = vmatmul.mubr.f32.gmra.mrb[38].mxu0 %v669_v59  ;;  %5833 = vst [vmem:[#allocation115_spill] sm:$0xff] %v4821_v57  ;;  %v715_v59 = vsub.f32 %v4794_v33, %v714_v23  ;;  %v724_v33 = vsub.f32 %v4805_v61, %v723_v16  ;;  %v738_v51 = vand.u32 4294901760, %v4821_v57  ;;  %5837 = vst [vmem:[#allocation119_spill] sm:$0xff] %v4838_v56  ;;  %v753_v18 = vand.u32 4294901760, %v4838_v56 }
  0xaa   : > { %2042 = vmatprep.mubr.f32.mxu0 %v678_v45  ;;  %v710_v45 = vand.u32 4294901760, %v709_v4  ;;  %5838 = vst [vmem:[#allocation120_spill] sm:$0xff] %v4840_v50  ;;  %v4846_v4 = vsub.f32 %v227_v31, %v4830_v9  ;;  %v4857_v31 = vsub.f32 %v230_v39, %v4840_v50 }
  0xab   : > { %687 = vmatmul.mubr.f32.gmra.mrb[40].mxu1 %v686_v22  ;;  %v229_v22 = vld [vmem:[%s3748_s16 + $0x1a0] sm:$0xff]  ;;  %v725_v15 = vand.u32 4294901760, %v724_v33  ;;  %v739_v17 = vsub.f32 %v4821_v57, %v738_v51  ;;  %v754_v50 = vsub.f32 %v4838_v56, %v753_v18 }
  0xac   : > { %696 = vmatprep.mubr.f32.mxu1 %v695_v26  ;;  %5839 = vst [vmem:[#allocation121_spill] sm:$0xff] %v4846_v4  ;;  %v716_v26 = vand.u32 4294901760, %v715_v59  ;;  %v4849_v10 = vand.u32 4294901760, %v229_v22  ;;  %5841 = vst [vmem:[#allocation123_spill] sm:$0xff] %v4857_v31  ;;  %v745_v59 = vsub.f32 %v4828_v27, %v744_v5  ;;  %v233_v57 = vld [vmem:[%s3748_s16 + $0x1c0] sm:$0xff]  ;;  %v768_v9 = vand.u32 4294901760, %v4857_v31 }
  0xad   : > { %2046 = vmatmul.mubr.f32.gmra.mrb[40].mxu0 %v684_v32  ;;  %v232_v32 = vld [vmem:[%s3748_s16 + $0x1b8] sm:$0xff]  ;;  %v740_v27 = vand.u32 4294901760, %v739_v17  ;;  %v755_v39 = vand.u32 4294901760, %v754_v50 }
  0xae   : > { %2053 = vmatprep.mubr.f32.mxu0 %v693_v12  ;;  %v730_v12 = vsub.f32 %v4816_v48, %v729_v29  ;;  %v4851_v61 = vand.u32 4294901760, %v232_v32  ;;  %v4862_v48 = vand.u32 4294901760, %v231_v46  ;;  %v4865_v33 = vsub.f32 %v229_v22, %v4849_v10 }
  0xaf   : > { %702 = vmatmul.mubr.f32.gmra.mrb[42].mxu1 %v701_v44  ;;  %v759_v44 = vand.u32 4294901760, %v4846_v4  ;;  %v769_v56 = vsub.f32 %v4857_v31, %v768_v9 }
  0xb0   : > { %5840 = vst [vmem:[#allocation122_spill] sm:$0xff] %v4851_v61  ;;  %711 = vmatprep.mubr.f32.mxu1 %v710_v45  ;;  %5842 = vst [vmem:[#allocation124_spill] sm:$0xff] %v4862_v48  ;;  %v731_v45 = vand.u32 4294901760, %v730_v12  ;;  %v4882_v12 = vand.u32 4294901760, %v233_v57 }
  0xb1   : > { %2057 = vmatmul.mubr.f32.gmra.mrb[42].mxu0 %v699_v63  ;;  %v234_v63 = vld [vmem:[%s3748_s16 + $0x1c8] sm:$0xff]  ;;  %5843 = vst [vmem:[#allocation125_spill] sm:$0xff] %v4865_v33  ;;  %v760_v22 = vsub.f32 %v4846_v4, %v759_v44 }
  0xb2   : > { %2064 = vmatprep.mubr.f32.mxu0 %v708_v14  ;;  %v4868_v14 = vsub.f32 %v232_v32, %v4851_v61  ;;  %v4880_v32 = vsub.f32 %v231_v46, %v4862_v48  ;;  %5847 = vst [vmem:[#allocation129_spill] sm:$0xff] %v4882_v12  ;;  %v235_v46 = vld [vmem:[%s3748_s16 + $0x1d0] sm:$0xff]  ;;  %v238_v48 = vld [vmem:[%s3748_s16 + $0x1e8] sm:$0xff] }
  0xb3   : > { %717 = vmatmul.mubr.f32.gmra.mrb[44].mxu1 %v716_v26  ;;  %v4875_v26 = vand.u32 4294901760, %v234_v63 }
  0xb4   : > { %5844 = vst [vmem:[#allocation126_spill] sm:$0xff] %v4868_v14  ;;  %726 = vmatprep.mubr.f32.mxu1 %v725_v15  ;;  %5846 = vst [vmem:[#allocation128_spill] sm:$0xff] %v4880_v32  ;;  %v774_v15 = vand.u32 4294901760, %v4865_v33  ;;  %v783_v17 = vand.u32 4294901760, %v4868_v14 }
  0xb5   : > { %2068 = vmatmul.mubr.f32.gmra.mrb[44].mxu0 %v714_v23  ;;  %5845 = vst [vmem:[#allocation127_spill] sm:$0xff] %v4875_v26  ;;  %v236_v23 = vld [vmem:[%s3748_s16 + $0x1d8] sm:$0xff]  ;;  %v4888_v61 = vsub.f32 %v234_v63, %v4875_v26 }
  0xb6   : > { %2075 = vmatprep.mubr.f32.mxu0 %v723_v16  ;;  %v746_v16 = vand.u32 4294901760, %v745_v59  ;;  %v4890_v4 = vand.u32 4294901760, %v236_v23  ;;  %v4896_v59 = vsub.f32 %v233_v57, %v4882_v12  ;;  %v775_v50 = vsub.f32 %v4865_v33, %v774_v15 }
  0xb7   : > { %732 = vmatmul.mubr.f32.gmra.mrb[46].mxu1 %v731_v45  ;;  %5848 = vst [vmem:[#allocation130_spill] sm:$0xff] %v4888_v61  ;;  %v761_v45 = vand.u32 4294901760, %v760_v22  ;;  %v770_v22 = vand.u32 4294901760, %v769_v56  ;;  %v798_v31 = vand.u32 4294901760, %v4888_v61  ;;  %v4908_v57 = vand.u32 4294901760, %v238_v48 }
  0xb8   : > { %741 = vmatprep.mubr.f32.mxu1 %v740_v27  ;;  %5849 = vst [vmem:[#allocation131_spill] sm:$0xff] %v4890_v4  ;;  %5850 = vst [vmem:[#allocation132_spill] sm:$0xff] %v4896_v59  ;;  %v4900_v27 = vand.u32 4294901760, %v235_v46  ;;  %v4906_v26 = vsub.f32 %v236_v23, %v4890_v4  ;;  %v804_v33 = vand.u32 4294901760, %v4896_v59  ;;  %v776_v63 = vand.u32 4294901760, %v775_v50 }
  0xb9   : > { %2079 = vmatmul.mubr.f32.gmra.mrb[46].mxu0 %v729_v29  ;;  %v789_v29 = vand.u32 4294901760, %v4880_v32  ;;  %5853 = vst [vmem:[#allocation135_spill] sm:$0xff] %v4908_v57  ;;  %v799_v23 = vsub.f32 %v4888_v61, %v798_v31  ;;  %v4922_v12 = vsub.f32 %v238_v48, %v4908_v57 }
  0xba   : > { %2086 = vmatprep.mubr.f32.mxu0 %v738_v51  ;;  %v784_v51 = vsub.f32 %v4868_v14, %v783_v17  ;;  %5851 = vst [vmem:[#allocation133_spill] sm:$0xff] %v4900_v27  ;;  %5852 = vst [vmem:[#allocation134_spill] sm:$0xff] %v4906_v26  ;;  %v813_v4 = vand.u32 4294901760, %v4906_v26  ;;  %v805_v50 = vsub.f32 %v4896_v59, %v804_v33 }
  0xbb   : > { %747 = vmatmul.mubr.f32.gmra.mrb[48].mxu1 %v746_v16  ;;  %v240_v16 = vld [vmem:[%s3748_s16 + $0x1f8] sm:$0xff]  ;;  %v790_v14 = vsub.f32 %v4880_v32, %v789_v29  ;;  %5856 = vst [vmem:[#allocation138_spill] sm:$0xff] %v4922_v12  ;;  %v800_v48 = vand.u32 4294901760, %v799_v23 }
  0xbc   : > { %756 = vmatprep.mubr.f32.mxu1 %v755_v39  ;;  %v785_v39 = vand.u32 4294901760, %v784_v51  ;;  %v4924_v32 = vand.u32 4294901760, %v240_v16  ;;  %v814_v61 = vsub.f32 %v4906_v26, %v813_v4 }
  0xbd   : > { %2090 = vmatmul.mubr.f32.gmra.mrb[48].mxu0 %v744_v5  ;;  %v237_v5 = vld [vmem:[%s3748_s16 + $0x1e0] sm:$0xff] }
  0xbe   : > { %2097 = vmatprep.mubr.f32.mxu0 %v753_v18  ;;  %v4915_v18 = vsub.f32 %v235_v46, %v4900_v27  ;;  %v4917_v56 = vand.u32 4294901760, %v237_v5  ;;  %5857 = vst [vmem:[#allocation139_spill] sm:$0xff] %v4924_v32 }
  0xbf   : > { %762 = vmatmul.mubr.f32.gmra.mrb[50].mxu1 %v761_v45  ;;  %v239_v45 = vld [vmem:[%s3748_s16 + $0x1f0] sm:$0xff] }
  0xc0   : > { %5854 = vst [vmem:[#allocation136_spill] sm:$0xff] %v4915_v18  ;;  %5855 = vst [vmem:[#allocation137_spill] sm:$0xff] %v4917_v56  ;;  %771 = vmatprep.mubr.f32.mxu1 %v770_v22  ;;  %v819_v46 = vand.u32 4294901760, %v4915_v18  ;;  %v4930_v51 = vsub.f32 %v237_v5, %v4917_v56  ;;  %v3116_v22 = vpack.c.bf16 %v5779_v0, %v5772_v3  ;;  %v5915_v3 = vld [vmem:[#allocation41_spill] sm:$0xff]  ;;  %v5916_v0 = vld [vmem:[#allocation88_spill] sm:$0xff] }
  0xc1   : > { %2101 = vmatmul.mubr.f32.gmra.mrb[50].mxu0 %v759_v44  ;;  %v791_v44 = vand.u32 4294901760, %v790_v14  ;;  %v828_v14 = vand.u32 4294901760, %v4922_v12 }
  0xc2   : > { %2108 = vmatprep.mubr.f32.mxu0 %v768_v9  ;;  %5858 = vst [vmem:[#allocation140_spill] sm:$0xff] %v4930_v51  ;;  %v4932_v9 = vand.u32 4294901760, %v239_v45  ;;  %v820_v5 = vsub.f32 %v4915_v18, %v819_v46  ;;  %v834_v59 = vand.u32 4294901760, %v4930_v51  ;;  %v5939_v18 = vld [vmem:[#allocation131_spill] sm:$0xff] }
  0xc3   : > { %777 = vmatmul.mubr.f32.gmra.mrb[52].mxu1 %v776_v63  ;;  %v4939_v63 = vsub.f32 %v240_v16, %v4924_v32 }
  0xc4   : > { %5859 = vst [vmem:[#allocation141_spill] sm:$0xff] %v4932_v9  ;;  %786 = vmatprep.mubr.f32.mxu1 %v785_v39  ;;  %v4944_v56 = vsub.f32 %v239_v45, %v4932_v9  ;;  %v829_v39 = vsub.f32 %v4922_v12, %v828_v14  ;;  %v821_v16 = vand.u32 4294901760, %v820_v5  ;;  %v3122_v5 = vpack.c.bf16 %v4681_v30, %v4655_v34  ;;  %v5923_v34 = vld [vmem:[#allocation97_spill] sm:$0xff]  ;;  %v5924_v30 = vld [vmem:[#allocation43_spill] sm:$0xff] }
  0xc5   : > { %2112 = vmatmul.mubr.f32.gmra.mrb[52].mxu0 %v774_v15  ;;  %5860 = vst [vmem:[#allocation142_spill] sm:$0xff] %v4939_v63  ;;  %v806_v15 = vand.u32 4294901760, %v805_v50  ;;  %v843_v23 = vand.u32 4294901760, %v4939_v63  ;;  %v3119_v50 = vpack.c.bf16 %v5797_v49, %v5789_v52  ;;  %v5918_v52 = vld [vmem:[#allocation44_spill] sm:$0xff]  ;;  %v5919_v49 = vld [vmem:[#allocation91_spill] sm:$0xff]  ;;  %v5938_v12 = vld [vmem:[#allocation129_spill] sm:$0xff] }
  0xc6   : > { %2119 = vmatprep.mubr.f32.mxu0 %v783_v17  ;;  %5861 = vst [vmem:[#allocation143_spill] sm:$0xff] %v4944_v56  ;;  %v815_v17 = vand.u32 4294901760, %v814_v61  ;;  %v830_v45 = vand.u32 4294901760, %v829_v39 }
  0xc7   : > { %792 = vmatmul.mubr.f32.gmra.mrb[54].mxu1 %v791_v44  ;;  %v849_v44 = vand.u32 4294901760, %v4944_v56  ;;  %v5940_v26 = vld [vmem:[#allocation137_spill] sm:$0xff] }
  0xc8   : > { %801 = vmatprep.mubr.f32.mxu1 %v800_v48 }
  0xc9   : > { %2123 = vmatmul.mubr.f32.gmra.mrb[54].mxu0 %v789_v29  ;;  %v835_v29 = vsub.f32 %v4930_v51, %v834_v59  ;;  %v850_v48 = vsub.f32 %v4944_v56, %v849_v44  ;;  %v5935_v56 = vld [vmem:[#allocation122_spill] sm:$0xff]  ;;  %v5937_v51 = vld [vmem:[#allocation127_spill] sm:$0xff] }
  0xca   : > { %2130 = vmatprep.mubr.f32.mxu0 %v798_v31  ;;  %v844_v31 = vsub.f32 %v4939_v63, %v843_v23  ;;  %v5936_v63 = vld [vmem:[#allocation124_spill] sm:$0xff] }
  0xcb   : > { %807 = vmatmul.mubr.f32.gmra.mrb[56].mxu1 %v806_v15  ;;  %v836_v61 = vand.u32 4294901760, %v835_v29  ;;  %v851_v15 = vand.u32 4294901760, %v850_v48  ;;  %v5869_v29 = vld [vmem:[#allocation17_spill] sm:$0xff]  ;;  %v5873_v48 = vld [vmem:[#allocation18_spill] sm:$0xff] }
  0xcc   : > { %816 = vmatprep.mubr.f32.mxu1 %v815_v17  ;;  %v5864_v17 = vld [vmem:[#allocation15_spill] sm:$0xff] }
  0xcd   : > { %2134 = vmatmul.mubr.f32.gmra.mrb[56].mxu0 %v804_v33  ;;  %v845_v33 = vand.u32 4294901760, %v844_v31  ;;  %v5871_v31 = vld [vmem:[#allocation26_spill] sm:$0xff] }
  0xce   : > { %2141 = vmatprep.mubr.f32.mxu0 %v813_v4  ;;  %v5862_v4 = vld [vmem:[#allocation7_spill] sm:$0xff] }
  0xcf   : > { %822 = vmatmul.mubr.f32.gmra.mrb[58].mxu1 %v821_v16  ;;  %v5865_v16 = vld [vmem:[#allocation21_spill] sm:$0xff] }
  0xd0   : > { %831 = vmatprep.mubr.f32.mxu1 %v830_v45  ;;  %v5870_v45 = vld [vmem:[#allocation24_spill] sm:$0xff] }
  0xd1   : > { %2145 = vmatmul.mubr.f32.gmra.mrb[58].mxu0 %v819_v46  ;;  %v5863_v46 = vld [vmem:[#allocation14_spill] sm:$0xff] }
  0xd2   : > { %2152 = vmatprep.mubr.f32.mxu0 %v828_v14  ;;  %v3077_v39 = vpack.c.bf16 %v5864_v17, %v5863_v46  ;;  %v5867_v14 = vld [vmem:[#allocation2_spill] sm:$0xff]  ;;  %v5875_v46 = vld [vmem:[#allocation32_spill] sm:$0xff] }
  0xd3   : > { %837 = vmatmul.mubr.f32.gmra.mrb[60].mxu1 %v836_v61  ;;  %v5872_v61 = vld [vmem:[#allocation3_spill] sm:$0xff]  ;;  %v5876_v17 = vld [vmem:[#allocation38_spill] sm:$0xff] }
  0xd4   : > { %846 = vmatprep.mubr.f32.mxu1 %v845_v33  ;;  %v5874_v33 = vld [vmem:[#allocation19_spill] sm:$0xff] }
  0xd5   : > { %2156 = vmatmul.mubr.f32.gmra.mrb[60].mxu0 %v834_v59  ;;  %v5866_v59 = vld [vmem:[#allocation23_spill] sm:$0xff] }
  0xd6   : > { %2163 = vmatprep.mubr.f32.mxu0 %v843_v23  ;;  %v5868_v23 = vld [vmem:[#allocation16_spill] sm:$0xff] }
  0xd7   : > { %852 = vmatmul.mubr.f32.gmra.mrb[62].mxu1 %v851_v15  ;;  %v3083_v15 = vpack.c.bf16 %v5874_v33, %v5873_v48  ;;  %v5883_v48 = vld [vmem:[#allocation6_spill] sm:$0xff]  ;;  %v3092_v33 = vpack.c.bf16 %v3931_v19, %v3921_v13  ;;  %v3098_v19 = vpack.c.bf16 %v3952_v25, %v3949_v24  ;;  %v5890_v24 = vld [vmem:[#allocation61_spill] sm:$0xff]  ;;  %v5891_v25 = vld [vmem:[#allocation64_spill] sm:$0xff] }
  0xd8   : > { %1082 = vmatprep.mubr.f32.mxu1 %v5862_v4  ;;  %v5886_v13 = vld [vmem:[#allocation10_spill] sm:$0xff] }
  0xd9   : > { %2167 = vmatmul.mubr.f32.gmra.mrb[62].mxu0 %v849_v44  ;;  %v3080_v44 = vpack.c.bf16 %v5869_v29, %v5868_v23  ;;  %v5878_v23 = vld [vmem:[#allocation40_spill] sm:$0xff]  ;;  %v5879_v29 = vld [vmem:[#allocation45_spill] sm:$0xff] }
  0xda   : > { %2333 = vmatprep.mubr.f32.mxu0 %v5862_v4 }
  0xdb   : > { %1084 = vmatmul.mubr.f32.vlgmr.msra.gmra.mrb[0].mxu1 %v5865_v16 }
  0xdc   : > { %3078 = vmatpush1.bf16.msra.mxu1 %v3077_v39  ;;  %1089 = vmatprep.mubr.f32.mxu1 %v5866_v59  ;;  %v5877_v39 = vld [vmem:[#allocation4_spill] sm:$0xff] }
  0xdd   : > { %2335 = vmatmul.mubr.f32.vlgmr.msra.gmra.mrb[0].mxu0 %v5865_v16  ;;  %3079 = vmatprep.subr.bf16.mxu1 %v5620_v53 }
  0xde   : > { %2340 = vmatprep.mubr.f32.mxu0 %v5866_v59  ;;  %3222 = vmatpush1.bf16.msra.mxu0 %v5867_v14  ;;  %v3086_v14 = vpack.c.bf16 %v3900_v6, %v3895_v2  ;;  %v5881_v2 = vld [vmem:[#allocation48_spill] sm:$0xff]  ;;  %v5882_v6 = vld [vmem:[#allocation50_spill] sm:$0xff] }
  0xdf   : > { %3223 = vmatprep.subr.bf16.mxu0 %v5620_v53  ;;  %1091 = vmatmul.mubr.f32.gmra.mrb[2].mxu1 %v5870_v45 }
  0xe0   : > { %1096 = vmatprep.mubr.f32.mxu1 %v5871_v31  ;;  %3081 = vmatpush1.bf16.msra.mxu1 %v3080_v44  ;;  %v5880_v44 = vld [vmem:[#allocation5_spill] sm:$0xff] }
  0xe1   : > { %2342 = vmatmul.mubr.f32.gmra.mrb[2].mxu0 %v5870_v45  ;;  %3082 = vmatprep.subr.bf16.mxu1 %v5620_v53 }
  0xe2   : > { %2347 = vmatprep.mubr.f32.mxu0 %v5871_v31  ;;  %3225 = vmatpush1.bf16.msra.mxu0 %v5872_v61  ;;  %v3089_v61 = vpack.c.bf16 %v3910_v8, %v3905_v7  ;;  %v5884_v7 = vld [vmem:[#allocation52_spill] sm:$0xff] }
  0xe3   : > { %3226 = vmatprep.subr.bf16.mxu0 %v5620_v53  ;;  %1098 = vmatmul.mubr.f32.gmra.mrb[4].mxu1 %v5875_v46  ;;  %v5885_v8 = vld [vmem:[#allocation8_spill] sm:$0xff] }
  0xe4   : > { %1103 = vmatprep.mubr.f32.mxu1 %v5876_v17  ;;  %3084 = vmatpush1.bf16.msra.mxu1 %v3083_v15  ;;  %v3095_v15 = vpack.c.bf16 %v3941_v21, %v3936_v20  ;;  %v5887_v20 = vld [vmem:[#allocation57_spill] sm:$0xff]  ;;  %v5888_v21 = vld [vmem:[#allocation59_spill] sm:$0xff] }
  0xe5   : > { %2349 = vmatmul.mubr.f32.gmra.mrb[4].mxu0 %v5875_v46  ;;  %3085 = vmatprep.subr.bf16.mxu1 %v5620_v53 }
  0xe6   : > { %2354 = vmatprep.mubr.f32.mxu0 %v5876_v17  ;;  %3228 = vmatpush1.bf16.msra.mxu0 %v5877_v39  ;;  %v5889_v39 = vld [vmem:[#allocation11_spill] sm:$0xff] }
  0xe7   : > { %3229 = vmatprep.subr.bf16.mxu0 %v5620_v53  ;;  %1105 = vmatmul.mubr.f32.gmra.mrb[6].mxu1 %v5878_v23 }
  0xe8   : > { %1110 = vmatprep.mubr.f32.mxu1 %v5879_v29  ;;  %3087 = vmatpush1.bf16.msra.mxu1 %v3086_v14  ;;  %v5892_v14 = vpack.c.bf16 %v3963_v36, %v3960_v35  ;;  %v5897_v35 = vld [vmem:[#allocation13_spill] sm:$0xff] }
  0xe9   : > { %2356 = vmatmul.mubr.f32.gmra.mrb[6].mxu0 %v5878_v23  ;;  %3088 = vmatprep.subr.bf16.mxu1 %v5620_v53  ;;  %v5898_v36 = vld [vmem:[#allocation69_spill] sm:$0xff] }
  0xea   : > { %2361 = vmatprep.mubr.f32.mxu0 %v5879_v29  ;;  %3231 = vmatpush1.bf16.msra.mxu0 %v5880_v44  ;;  %v5893_v44 = vld [vmem:[#allocation12_spill] sm:$0xff] }
  0xeb   : > { %3232 = vmatprep.subr.bf16.mxu0 %v5620_v53  ;;  %1112 = vmatmul.mubr.f32.gmra.mrb[8].mxu1 %v5881_v2 }
  0xec   : > { %1117 = vmatprep.mubr.f32.mxu1 %v5882_v6  ;;  %3090 = vmatpush1.bf16.msra.mxu1 %v3089_v61  ;;  %v5894_v61 = vld [vmem:[#allocation65_spill] sm:$0xff] }
  0xed   : > { %2363 = vmatmul.mubr.f32.gmra.mrb[8].mxu0 %v5881_v2  ;;  %3091 = vmatprep.subr.bf16.mxu1 %v5620_v53 }
  0xee   : > { %2368 = vmatprep.mubr.f32.mxu0 %v5882_v6  ;;  %3234 = vmatpush1.bf16.msra.mxu0 %v5883_v48  ;;  %v5895_v48 = vld [vmem:[#allocation68_spill] sm:$0xff] }
  0xef   : > { %3235 = vmatprep.subr.bf16.mxu0 %v5620_v53  ;;  %1119 = vmatmul.mubr.f32.gmra.mrb[10].mxu1 %v5884_v7 }
  0xf0   : > { %1124 = vmatprep.mubr.f32.mxu1 %v4158_v11  ;;  %3093 = vmatpush1.bf16.msra.mxu1 %v3092_v33  ;;  %v5896_v33 = vpack.c.bf16 %v3970_v42, %v3965_v40  ;;  %v5901_v40 = vld [vmem:[#allocation20_spill] sm:$0xff]  ;;  %v5902_v42 = vld [vmem:[#allocation74_spill] sm:$0xff] }
  0xf1   : > { %2370 = vmatmul.mubr.f32.gmra.mrb[10].mxu0 %v5884_v7  ;;  %3094 = vmatprep.subr.bf16.mxu1 %v5620_v53 }
  0xf2   : > { %2375 = vmatprep.mubr.f32.mxu0 %v4158_v11  ;;  %3237 = vmatpush1.bf16.msra.mxu0 %v5885_v8  ;;  %v5899_v8 = vld [vmem:[#allocation70_spill] sm:$0xff] }
  0xf3   : > { %3238 = vmatprep.subr.bf16.mxu0 %v5620_v53  ;;  %1126 = vmatmul.mubr.f32.gmra.mrb[12].mxu1 %v4160_v38 }
  0xf4   : > { %1131 = vmatprep.mubr.f32.mxu1 %v4188_v1  ;;  %3096 = vmatpush1.bf16.msra.mxu1 %v3095_v15  ;;  %v5900_v15 = vpack.c.bf16 %v3978_v47, %v3973_v43  ;;  %v5905_v43 = vld [vmem:[#allocation22_spill] sm:$0xff]  ;;  %v5906_v47 = vld [vmem:[#allocation77_spill] sm:$0xff] }
  0xf5   : > { %2377 = vmatmul.mubr.f32.gmra.mrb[12].mxu0 %v4160_v38  ;;  %3097 = vmatprep.subr.bf16.mxu1 %v5620_v53 }
  0xf6   : > { %2382 = vmatprep.mubr.f32.mxu0 %v4188_v1  ;;  %3240 = vmatpush1.bf16.msra.mxu0 %v5886_v13  ;;  %v5903_v13 = vld [vmem:[#allocation75_spill] sm:$0xff] }
  0xf7   : > { %3241 = vmatprep.subr.bf16.mxu0 %v5620_v53  ;;  %1133 = vmatmul.mubr.f32.gmra.mrb[14].mxu1 %v5887_v20 }
  0xf8   : > { %1138 = vmatprep.mubr.f32.mxu1 %v5888_v21  ;;  %3099 = vmatpush1.bf16.msra.mxu1 %v3098_v19  ;;  %v5904_v19 = vpack.c.bf16 %v3992_v55, %v3990_v54  ;;  %v5909_v54 = vld [vmem:[#allocation25_spill] sm:$0xff]  ;;  %v5910_v55 = vld [vmem:[#allocation82_spill] sm:$0xff] }
  0xf9   : > { %2384 = vmatmul.mubr.f32.gmra.mrb[14].mxu0 %v5887_v20  ;;  %3100 = vmatprep.subr.bf16.mxu1 %v5620_v53 }
  0xfa   : > { %2389 = vmatprep.mubr.f32.mxu0 %v5888_v21  ;;  %3243 = vmatpush1.bf16.msra.mxu0 %v5889_v39  ;;  %v5907_v39 = vld [vmem:[#allocation79_spill] sm:$0xff] }
  0xfb   : > { %3244 = vmatprep.subr.bf16.mxu0 %v5620_v53  ;;  %1140 = vmatmul.mubr.f32.gmra.mrb[16].mxu1 %v5890_v24 }
  0xfc   : > { %1145 = vmatprep.mubr.f32.mxu1 %v5891_v25  ;;  %3102 = vmatpush1.bf16.msra.mxu1 %v5892_v14  ;;  %v5908_v14 = vpack.c.bf16 %v5758_v58, %v4001_v60  ;;  %v5912_v60 = vld [vmem:[#allocation33_spill] sm:$0xff]  ;;  %v5913_v58 = vld [vmem:[#allocation84_spill] sm:$0xff] }
  0xfd   : > { %2391 = vmatmul.mubr.f32.gmra.mrb[16].mxu0 %v5890_v24  ;;  %3103 = vmatprep.subr.bf16.mxu1 %v5620_v53 }
  0xfe   : > { %2396 = vmatprep.mubr.f32.mxu0 %v5891_v25  ;;  %3246 = vmatpush1.bf16.msra.mxu0 %v5893_v44  ;;  %v5911_v44 = vld [vmem:[#allocation83_spill] sm:$0xff] }
  0xff   : > { %3247 = vmatprep.subr.bf16.mxu0 %v5620_v53  ;;  %1147 = vmatmul.mubr.f32.gmra.mrb[18].mxu1 %v5894_v61 }
 0x100   : > { %1152 = vmatprep.mubr.f32.mxu1 %v5895_v48  ;;  %3105 = vmatpush1.bf16.msra.mxu1 %v5896_v33  ;;  %v5914_v33 = vld [vmem:[#allocation87_spill] sm:$0xff] }
 0x101   : > { %2398 = vmatmul.mubr.f32.gmra.mrb[18].mxu0 %v5894_v61  ;;  %3106 = vmatprep.subr.bf16.mxu1 %v5620_v53 }
 0x102   : > { %2403 = vmatprep.mubr.f32.mxu0 %v5895_v48  ;;  %3249 = vmatpush1.bf16.msra.mxu0 %v5897_v35  ;;  %v5922_v35 = vld [vmem:[#allocation96_spill] sm:$0xff] }
 0x103   : > { %3250 = vmatprep.subr.bf16.mxu0 %v5620_v53  ;;  %1154 = vmatmul.mubr.f32.gmra.mrb[20].mxu1 %v5898_v36 }
 0x104   : > { %1159 = vmatprep.mubr.f32.mxu1 %v5899_v8  ;;  %3108 = vmatpush1.bf16.msra.mxu1 %v5900_v15  ;;  %v5926_v15 = vld [vmem:[#allocation103_spill] sm:$0xff] }
 0x105   : > { %2405 = vmatmul.mubr.f32.gmra.mrb[20].mxu0 %v5898_v36  ;;  %3109 = vmatprep.subr.bf16.mxu1 %v5620_v53 }
 0x106   : > { %2410 = vmatprep.mubr.f32.mxu0 %v5899_v8  ;;  %3252 = vmatpush1.bf16.msra.mxu0 %v5901_v40  ;;  %v5927_v40 = vld [vmem:[#allocation104_spill] sm:$0xff] }
 0x107   : > { %3253 = vmatprep.subr.bf16.mxu0 %v5620_v53  ;;  %1161 = vmatmul.mubr.f32.gmra.mrb[22].mxu1 %v5902_v42 }
 0x108   : > { %1166 = vmatprep.mubr.f32.mxu1 %v5903_v13  ;;  %3111 = vmatpush1.bf16.msra.mxu1 %v5904_v19  ;;  %v5928_v19 = vld [vmem:[#allocation106_spill] sm:$0xff] }
 0x109   : > { %2412 = vmatmul.mubr.f32.gmra.mrb[22].mxu0 %v5902_v42  ;;  %3112 = vmatprep.subr.bf16.mxu1 %v5620_v53 }
 0x10a   : > { %2417 = vmatprep.mubr.f32.mxu0 %v5903_v13  ;;  %3255 = vmatpush1.bf16.msra.mxu0 %v5905_v43  ;;  %v5929_v43 = vld [vmem:[#allocation109_spill] sm:$0xff] }
 0x10b   : > { %3256 = vmatprep.subr.bf16.mxu0 %v5620_v53  ;;  %1168 = vmatmul.mubr.f32.gmra.mrb[24].mxu1 %v5906_v47 }
 0x10c   : > { %1173 = vmatprep.mubr.f32.mxu1 %v5907_v39  ;;  %3114 = vmatpush1.bf16.msra.mxu1 %v5908_v14  ;;  %v5930_v14 = vld [vmem:[#allocation112_spill] sm:$0xff] }
 0x10d   : > { %2419 = vmatmul.mubr.f32.gmra.mrb[24].mxu0 %v5906_v47  ;;  %3115 = vmatprep.subr.bf16.mxu1 %v5620_v53 }
 0x10e   : > { %2424 = vmatprep.mubr.f32.mxu0 %v5907_v39  ;;  %3258 = vmatpush1.bf16.msra.mxu0 %v5909_v54  ;;  %v5931_v54 = vld [vmem:[#allocation113_spill] sm:$0xff] }
 0x10f   : > { %3259 = vmatprep.subr.bf16.mxu0 %v5620_v53  ;;  %1175 = vmatmul.mubr.f32.gmra.mrb[26].mxu1 %v5910_v55 }
 0x110   : > { %1180 = vmatprep.mubr.f32.mxu1 %v5911_v44  ;;  %3117 = vmatpush1.bf16.msra.mxu1 %v3116_v22  ;;  %v5917_v22 = vld [vmem:[#allocation90_spill] sm:$0xff] }
 0x111   : > { %2426 = vmatmul.mubr.f32.gmra.mrb[26].mxu0 %v5910_v55  ;;  %3118 = vmatprep.subr.bf16.mxu1 %v5620_v53 }
 0x112   : > { %2431 = vmatprep.mubr.f32.mxu0 %v5911_v44  ;;  %3261 = vmatpush1.bf16.msra.mxu0 %v5912_v60  ;;  %v5932_v60 = vld [vmem:[#allocation116_spill] sm:$0xff] }
 0x113   : > { %3262 = vmatprep.subr.bf16.mxu0 %v5620_v53  ;;  %1182 = vmatmul.mubr.f32.gmra.mrb[28].mxu1 %v5913_v58 }
 0x114   : > { %1187 = vmatprep.mubr.f32.mxu1 %v5914_v33  ;;  %3120 = vmatpush1.bf16.msra.mxu1 %v3119_v50  ;;  %v5920_v50 = vld [vmem:[#allocation92_spill] sm:$0xff] }
 0x115   : > { %2433 = vmatmul.mubr.f32.gmra.mrb[28].mxu0 %v5913_v58  ;;  %3121 = vmatprep.subr.bf16.mxu1 %v5620_v53 }
 0x116   : > { %2438 = vmatprep.mubr.f32.mxu0 %v5914_v33  ;;  %3264 = vmatpush1.bf16.msra.mxu0 %v5915_v3  ;;  %v5933_v3 = vld [vmem:[#allocation118_spill] sm:$0xff] }
 0x117   : > { %3265 = vmatprep.subr.bf16.mxu0 %v5620_v53  ;;  %1189 = vmatmul.mubr.f32.gmra.mrb[30].mxu1 %v5916_v0  ;;  %v5921_v53 = vld [vmem:[#allocation94_spill] sm:$0xff] }
 0x118   : > { %1194 = vmatprep.mubr.f32.mxu1 %v5917_v22  ;;  %3123 = vmatpush1.bf16.msra.mxu1 %v3122_v5  ;;  %v5925_v5 = vld [vmem:[#allocation28_spill] sm:$0xff] }
 0x119   : > { %2440 = vmatmul.mubr.f32.gmra.mrb[30].mxu0 %v5916_v0 }
 0x11a   : > { %2445 = vmatprep.mubr.f32.mxu0 %v5917_v22  ;;  %3267 = vmatpush1.bf16.msra.mxu0 %v5918_v52  ;;  %v5934_v52 = vld [vmem:[#allocation120_spill] sm:$0xff] }
 0x11b   : > { %1196 = vmatmul.mubr.f32.gmra.mrb[32].mxu1 %v5919_v49 }
 0x11c   : > { %1201 = vmatprep.mubr.f32.mxu1 %v5920_v50 }
 0x11d   : > { %2447 = vmatmul.mubr.f32.gmra.mrb[32].mxu0 %v5919_v49 }
 0x11e   : > { %2452 = vmatprep.mubr.f32.mxu0 %v5920_v50 }
 0x11f   : > { %1203 = vmatmul.mubr.f32.gmra.mrb[34].mxu1 %v5921_v53 }
 0x120   : > { %1208 = vmatprep.mubr.f32.mxu1 %v5922_v35 }
 0x121   : > { %2454 = vmatmul.mubr.f32.gmra.mrb[34].mxu0 %v5921_v53 }
 0x122   : > { %2459 = vmatprep.mubr.f32.mxu0 %v5922_v35 }
 0x123   : > { %1210 = vmatmul.mubr.f32.gmra.mrb[36].mxu1 %v5923_v34 }
 0x124   : > { %1215 = vmatprep.mubr.f32.mxu1 %v5924_v30 }
 0x125   : > { %2461 = vmatmul.mubr.f32.gmra.mrb[36].mxu0 %v5923_v34 }
 0x126   : > { %2466 = vmatprep.mubr.f32.mxu0 %v5924_v30 }
 0x127   : > { %1217 = vmatmul.mubr.f32.gmra.mrb[38].mxu1 %v5925_v5 }
 0x128   : > { %1222 = vmatprep.mubr.f32.mxu1 %v4715_v41 }
 0x129   : > { %2468 = vmatmul.mubr.f32.gmra.mrb[38].mxu0 %v5925_v5 }
 0x12a   : > { %2473 = vmatprep.mubr.f32.mxu0 %v4715_v41 }
 0x12b   : > { %1224 = vmatmul.mubr.f32.gmra.mrb[40].mxu1 %v4726_v37 }
 0x12c   : > { %1229 = vmatprep.mubr.f32.mxu1 %v4743_v28 }
 0x12d   : > { %2475 = vmatmul.mubr.f32.gmra.mrb[40].mxu0 %v4726_v37 }
 0x12e   : > { %2480 = vmatprep.mubr.f32.mxu0 %v4743_v28 }
 0x12f   : > { %1231 = vmatmul.mubr.f32.gmra.mrb[42].mxu1 %v5926_v15 }
 0x130   : > { %1236 = vmatprep.mubr.f32.mxu1 %v5927_v40 }
 0x131   : > { %2482 = vmatmul.mubr.f32.gmra.mrb[42].mxu0 %v5926_v15 }
 0x132   : > { %2487 = vmatprep.mubr.f32.mxu0 %v5927_v40 }
 0x133   : > { %1238 = vmatmul.mubr.f32.gmra.mrb[44].mxu1 %v5928_v19 }
 0x134   : > { %1243 = vmatprep.mubr.f32.mxu1 %v5929_v43 }
 0x135   : > { %2489 = vmatmul.mubr.f32.gmra.mrb[44].mxu0 %v5928_v19 }
 0x136   : > { %2494 = vmatprep.mubr.f32.mxu0 %v5929_v43 }
 0x137   : > { %1245 = vmatmul.mubr.f32.gmra.mrb[46].mxu1 %v4798_v62 }
 0x138   : > { %1250 = vmatprep.mubr.f32.mxu1 %v5930_v14 }
 0x139   : > { %2496 = vmatmul.mubr.f32.gmra.mrb[46].mxu0 %v4798_v62 }
 0x13a   : > { %2501 = vmatprep.mubr.f32.mxu0 %v5930_v14 }
 0x13b   : > { %1252 = vmatmul.mubr.f32.gmra.mrb[48].mxu1 %v5931_v54 }
 0x13c   : > { %1257 = vmatprep.mubr.f32.mxu1 %v5932_v60 }
 0x13d   : > { %2503 = vmatmul.mubr.f32.gmra.mrb[48].mxu0 %v5931_v54 }
 0x13e   : > { %2508 = vmatprep.mubr.f32.mxu0 %v5932_v60 }
 0x13f   : > { %1259 = vmatmul.mubr.f32.gmra.mrb[50].mxu1 %v5933_v3 }
 0x140   : > { %1264 = vmatprep.mubr.f32.mxu1 %v5934_v52 }
 0x141   : > { %2510 = vmatmul.mubr.f32.gmra.mrb[50].mxu0 %v5933_v3 }
 0x142   : > { %2515 = vmatprep.mubr.f32.mxu0 %v5934_v52 }
 0x143   : > { %1266 = vmatmul.mubr.f32.gmra.mrb[52].mxu1 %v4849_v10 }
 0x144   : > { %1271 = vmatprep.mubr.f32.mxu1 %v5935_v56 }
 0x145   : > { %2517 = vmatmul.mubr.f32.gmra.mrb[52].mxu0 %v4849_v10 }
 0x146   : > { %2522 = vmatprep.mubr.f32.mxu0 %v5935_v56 }
 0x147   : > { %1273 = vmatmul.mubr.f32.gmra.mrb[54].mxu1 %v5936_v63 }
 0x148   : > { %1278 = vmatprep.mubr.f32.mxu1 %v5937_v51 }
 0x149   : > { %2524 = vmatmul.mubr.f32.gmra.mrb[54].mxu0 %v5936_v63 }
 0x14a   : > { %2529 = vmatprep.mubr.f32.mxu0 %v5937_v51 }
 0x14b   : > { %1280 = vmatmul.mubr.f32.gmra.mrb[56].mxu1 %v5938_v12 }
 0x14c   : > { %1285 = vmatprep.mubr.f32.mxu1 %v5939_v18 }
 0x14d   : > { %2531 = vmatmul.mubr.f32.gmra.mrb[56].mxu0 %v5938_v12 }
 0x14e   : > { %2536 = vmatprep.mubr.f32.mxu0 %v5939_v18  ;;  %v5941_v18 = vld [vmem:[#allocation9_spill] sm:$0xff] }
 0x14f   : > { %1287 = vmatmul.mubr.f32.gmra.mrb[58].mxu1 %v4900_v27 }
 0x150   : > { %1292 = vmatprep.mubr.f32.mxu1 %v4908_v57 }
 0x151   : > { %2538 = vmatmul.mubr.f32.gmra.mrb[58].mxu0 %v4900_v27  ;;  %v5942_v27 = vld [vmem:[#allocation29_spill] sm:$0xff] }
 0x152   : > { %2543 = vmatprep.mubr.f32.mxu0 %v4908_v57  ;;  %v5943_v57 = vld [vmem:[#allocation34_spill] sm:$0xff] }
 0x153   : > { %1294 = vmatmul.mubr.f32.gmra.mrb[60].mxu1 %v5940_v26 }
 0x154   : > { %1299 = vmatprep.mubr.f32.mxu1 %v4924_v32 }
 0x155   : > { %2545 = vmatmul.mubr.f32.gmra.mrb[60].mxu0 %v5940_v26  ;;  %v5944_v26 = vld [vmem:[#allocation35_spill] sm:$0xff] }
 0x156   : > { %2550 = vmatprep.mubr.f32.mxu0 %v4924_v32  ;;  %v5945_v32 = vld [vmem:[#allocation37_spill] sm:$0xff] }
 0x157   : > { %1301 = vmatmul.mubr.f32.gmra.mrb[62].mxu1 %v4932_v9 }
 0x158   : > { %1436 = vmatprep.mubr.f32.mxu1 %v5941_v18  ;;  %v5947_v18 = vld [vmem:[#allocation46_spill] sm:$0xff] }
 0x159   : > { %2552 = vmatmul.mubr.f32.gmra.mrb[62].mxu0 %v4932_v9  ;;  %v5946_v9 = vld [vmem:[#allocation39_spill] sm:$0xff] }
 0x15a   : > { %2654 = vmatprep.mubr.f32.mxu0 %v5862_v4  ;;  %v5953_v4 = vld [vmem:[#allocation55_spill] sm:$0xff] }
 0x15b   : > { %1439 = vmatmul.mubr.f32.vlgmr.msra.gmra.mrb[0].mxu1 %v5942_v27  ;;  %v5948_v27 = vld [vmem:[#allocation47_spill] sm:$0xff] }
 0x15c   : > { %1445 = vmatprep.mubr.f32.mxu1 %v5943_v57  ;;  %v5949_v57 = vld [vmem:[#allocation49_spill] sm:$0xff] }
 0x15d   : > { %2656 = vmatmul.mubr.f32.vlgmr.msra.gmra.mrb[0].mxu0 %v5865_v16  ;;  %v5954_v16 = vld [vmem:[#allocation56_spill] sm:$0xff] }
 0x15e   : > { %2661 = vmatprep.mubr.f32.mxu0 %v5866_v59  ;;  %v5955_v59 = vld [vmem:[#allocation58_spill] sm:$0xff] }
 0x15f   : > { %1448 = vmatmul.mubr.f32.gmra.mrb[2].mxu1 %v5944_v26  ;;  %v5950_v26 = vld [vmem:[#allocation51_spill] sm:$0xff] }
 0x160   : > { %1454 = vmatprep.mubr.f32.mxu1 %v5945_v32  ;;  %v5951_v32 = vld [vmem:[#allocation53_spill] sm:$0xff] }
 0x161   : > { %2663 = vmatmul.mubr.f32.gmra.mrb[2].mxu0 %v5870_v45  ;;  %v5956_v45 = vld [vmem:[#allocation60_spill] sm:$0xff] }
 0x162   : > { %2668 = vmatprep.mubr.f32.mxu0 %v5871_v31  ;;  %v5957_v31 = vld [vmem:[#allocation62_spill] sm:$0xff] }
 0x163   : > { %1457 = vmatmul.mubr.f32.gmra.mrb[4].mxu1 %v5946_v9  ;;  %v5952_v9 = vld [vmem:[#allocation54_spill] sm:$0xff] }
 0x164   : > { %1463 = vmatprep.mubr.f32.mxu1 %v5947_v18  ;;  %v5301_v18 = vld [vmem:[%s5378_s2] ss:$0 sm:$0xff] }
 0x165   : > { %2670 = vmatmul.mubr.f32.gmra.mrb[4].mxu0 %v5875_v46  ;;  %v5958_v46 = vld [vmem:[#allocation63_spill] sm:$0xff] }
 0x166   : > { %2675 = vmatprep.mubr.f32.mxu0 %v5876_v17  ;;  %v5962_v17 = vld [vmem:[#allocation72_spill] sm:$0xff] }
 0x167   : > { %1466 = vmatmul.mubr.f32.gmra.mrb[6].mxu1 %v5948_v27 }
 0x168   : > { %1472 = vmatprep.mubr.f32.mxu1 %v5949_v57 }
 0x169   : > { %2677 = vmatmul.mubr.f32.gmra.mrb[6].mxu0 %v5878_v23  ;;  %v5963_v23 = vld [vmem:[#allocation73_spill] sm:$0xff] }
 0x16a   : > { %2682 = vmatprep.mubr.f32.mxu0 %v5879_v29  ;;  %v5964_v29 = vld [vmem:[#allocation76_spill] sm:$0xff] }
 0x16b   : > { %1475 = vmatmul.mubr.f32.gmra.mrb[8].mxu1 %v5950_v26 }
 0x16c   : > { %1481 = vmatprep.mubr.f32.mxu1 %v5951_v32 }
 0x16d   : > { %2684 = vmatmul.mubr.f32.gmra.mrb[8].mxu0 %v5881_v2  ;;  %v5965_v2 = vld [vmem:[#allocation78_spill] sm:$0xff] }
 0x16e   : > { %2689 = vmatprep.mubr.f32.mxu0 %v5882_v6  ;;  %v5966_v6 = vld [vmem:[#allocation80_spill] sm:$0xff] }
 0x16f   : > { %1484 = vmatmul.mubr.f32.gmra.mrb[10].mxu1 %v5952_v9 }
 0x170   : > { %1490 = vmatprep.mubr.f32.mxu1 %v5953_v4 }
 0x171   : > { %2691 = vmatmul.mubr.f32.gmra.mrb[10].mxu0 %v5884_v7  ;;  %v5967_v7 = vld [vmem:[#allocation81_spill] sm:$0xff] }
 0x172   : > { %2696 = vmatprep.mubr.f32.mxu0 %v4158_v11  ;;  %v5959_v11 = vld [vmem:[#allocation66_spill] sm:$0xff] }
 0x173   : > { %1493 = vmatmul.mubr.f32.gmra.mrb[12].mxu1 %v5954_v16 }
 0x174   : > { %1499 = vmatprep.mubr.f32.mxu1 %v5955_v59 }
 0x175   : > { %2698 = vmatmul.mubr.f32.gmra.mrb[12].mxu0 %v4160_v38  ;;  %v5960_v38 = vld [vmem:[#allocation67_spill] sm:$0xff] }
 0x176   : > { %2703 = vmatprep.mubr.f32.mxu0 %v4188_v1  ;;  %v5961_v1 = vld [vmem:[#allocation71_spill] sm:$0xff] }
 0x177   : > { %1502 = vmatmul.mubr.f32.gmra.mrb[14].mxu1 %v5956_v45 }
 0x178   : > { %1508 = vmatprep.mubr.f32.mxu1 %v5957_v31 }
 0x179   : > { %2705 = vmatmul.mubr.f32.gmra.mrb[14].mxu0 %v5887_v20  ;;  %v5968_v20 = vld [vmem:[#allocation85_spill] sm:$0xff] }
 0x17a   : > { %2710 = vmatprep.mubr.f32.mxu0 %v5888_v21  ;;  %v5969_v21 = vld [vmem:[#allocation86_spill] sm:$0xff] }
 0x17b   : > { %1511 = vmatmul.mubr.f32.gmra.mrb[16].mxu1 %v5958_v46 }
 0x17c   : > { %1517 = vmatprep.mubr.f32.mxu1 %v5959_v11 }
 0x17d   : > { %2712 = vmatmul.mubr.f32.gmra.mrb[16].mxu0 %v5890_v24  ;;  %v5970_v24 = vld [vmem:[#allocation30_spill] sm:$0xff] }
 0x17e   : > { %2717 = vmatprep.mubr.f32.mxu0 %v5891_v25  ;;  %v5971_v25 = vld [vmem:[#allocation89_spill] sm:$0xff] }
 0x17f   : > { %1520 = vmatmul.mubr.f32.gmra.mrb[18].mxu1 %v5960_v38 }
 0x180   : > { %1526 = vmatprep.mubr.f32.mxu1 %v5961_v1 }
 0x181   : > { %2719 = vmatmul.mubr.f32.gmra.mrb[18].mxu0 %v5894_v61  ;;  %v5972_v61 = vld [vmem:[#allocation31_spill] sm:$0xff] }
 0x182   : > { %2724 = vmatprep.mubr.f32.mxu0 %v5895_v48  ;;  %v5973_v48 = vld [vmem:[#allocation93_spill] sm:$0xff] }
 0x183   : > { %1529 = vmatmul.mubr.f32.gmra.mrb[20].mxu1 %v5962_v17 }
 0x184   : > { %1535 = vmatprep.mubr.f32.mxu1 %v5963_v23 }
 0x185   : > { %2726 = vmatmul.mubr.f32.gmra.mrb[20].mxu0 %v5898_v36  ;;  %v5974_v36 = vld [vmem:[#allocation36_spill] sm:$0xff] }
 0x186   : > { %2731 = vmatprep.mubr.f32.mxu0 %v5899_v8  ;;  %v5975_v8 = vld [vmem:[#allocation95_spill] sm:$0xff] }
 0x187   : > { %1538 = vmatmul.mubr.f32.gmra.mrb[22].mxu1 %v5964_v29 }
 0x188   : > { %1544 = vmatprep.mubr.f32.mxu1 %v5965_v2 }
 0x189   : > { %2733 = vmatmul.mubr.f32.gmra.mrb[22].mxu0 %v5902_v42  ;;  %v5976_v42 = vld [vmem:[#allocation42_spill] sm:$0xff] }
 0x18a   : > { %2738 = vmatprep.mubr.f32.mxu0 %v5903_v13  ;;  %v5977_v13 = vld [vmem:[#allocation27_spill] sm:$0xff] }
 0x18b   : > { %1547 = vmatmul.mubr.f32.gmra.mrb[24].mxu1 %v5966_v6 }
 0x18c   : > { %1553 = vmatprep.mubr.f32.mxu1 %v5967_v7 }
 0x18d   : > { %2740 = vmatmul.mubr.f32.gmra.mrb[24].mxu0 %v5906_v47  ;;  %v5978_v47 = vld [vmem:[#allocation98_spill] sm:$0xff] }
 0x18e   : > { %2745 = vmatprep.mubr.f32.mxu0 %v5907_v39  ;;  %v5979_v39 = vld [vmem:[#allocation99_spill] sm:$0xff] }
 0x18f   : > { %1556 = vmatmul.mubr.f32.gmra.mrb[26].mxu1 %v5968_v20 }
 0x190   : > { %1562 = vmatprep.mubr.f32.mxu1 %v5969_v21 }
 0x191   : > { %2747 = vmatmul.mubr.f32.gmra.mrb[26].mxu0 %v5910_v55  ;;  %v5980_v55 = vld [vmem:[#allocation100_spill] sm:$0xff] }
 0x192   : > { %2752 = vmatprep.mubr.f32.mxu0 %v5911_v44  ;;  %v5981_v44 = vld [vmem:[#allocation101_spill] sm:$0xff] }
 0x193   : > { %1565 = vmatmul.mubr.f32.gmra.mrb[28].mxu1 %v5970_v24 }
 0x194   : > { %1571 = vmatprep.mubr.f32.mxu1 %v5971_v25 }
 0x195   : > { %2754 = vmatmul.mubr.f32.gmra.mrb[28].mxu0 %v5913_v58  ;;  %v5982_v58 = vld [vmem:[#allocation102_spill] sm:$0xff] }
 0x196   : > { %2759 = vmatprep.mubr.f32.mxu0 %v5914_v33  ;;  %v5983_v33 = vld [vmem:[#allocation105_spill] sm:$0xff] }
 0x197   : > { %1574 = vmatmul.mubr.f32.gmra.mrb[30].mxu1 %v5972_v61 }
 0x198   : > { %1580 = vmatprep.mubr.f32.mxu1 %v5973_v48 }
 0x199   : > { %2761 = vmatmul.mubr.f32.gmra.mrb[30].mxu0 %v5916_v0  ;;  %v5984_v0 = vld [vmem:[#allocation107_spill] sm:$0xff] }
 0x19a   : > { %2766 = vmatprep.mubr.f32.mxu0 %v5917_v22  ;;  %v5985_v22 = vld [vmem:[#allocation108_spill] sm:$0xff] }
 0x19b   : > { %1583 = vmatmul.mubr.f32.gmra.mrb[32].mxu1 %v5974_v36 }
 0x19c   : > { %1589 = vmatprep.mubr.f32.mxu1 %v5975_v8 }
 0x19d   : > { %2768 = vmatmul.mubr.f32.gmra.mrb[32].mxu0 %v5919_v49  ;;  %v5986_v49 = vld [vmem:[#allocation110_spill] sm:$0xff] }
 0x19e   : > { %2773 = vmatprep.mubr.f32.mxu0 %v5920_v50  ;;  %v5990_v50 = vld [vmem:[#allocation117_spill] sm:$0xff] }
 0x19f   : > { %1592 = vmatmul.mubr.f32.gmra.mrb[34].mxu1 %v5976_v42 }
 0x1a0   : > { %1598 = vmatprep.mubr.f32.mxu1 %v5977_v13 }
 0x1a1   : > { %2775 = vmatmul.mubr.f32.gmra.mrb[34].mxu0 %v5921_v53  ;;  %v5991_v53 = vld [vmem:[#allocation119_spill] sm:$0xff] }
 0x1a2   : > { %2780 = vmatprep.mubr.f32.mxu0 %v5922_v35  ;;  %v5992_v35 = vld [vmem:[#allocation121_spill] sm:$0xff] }
 0x1a3   : > { %1601 = vmatmul.mubr.f32.gmra.mrb[36].mxu1 %v5978_v47 }
 0x1a4   : > { %1607 = vmatprep.mubr.f32.mxu1 %v5979_v39 }
 0x1a5   : > { %2782 = vmatmul.mubr.f32.gmra.mrb[36].mxu0 %v5923_v34  ;;  %v5993_v34 = vld [vmem:[#allocation123_spill] sm:$0xff] }
 0x1a6   : > { %2787 = vmatprep.mubr.f32.mxu0 %v5924_v30  ;;  %v5995_v30 = vld [vmem:[#allocation126_spill] sm:$0xff] }
 0x1a7   : > { %1610 = vmatmul.mubr.f32.gmra.mrb[38].mxu1 %v5980_v55 }
 0x1a8   : > { %1616 = vmatprep.mubr.f32.mxu1 %v5981_v44 }
 0x1a9   : > { %2789 = vmatmul.mubr.f32.gmra.mrb[38].mxu0 %v5925_v5  ;;  %v5996_v5 = vld [vmem:[#allocation128_spill] sm:$0xff] }
 0x1aa   : > { %2794 = vmatprep.mubr.f32.mxu0 %v4715_v41  ;;  %v5987_v41 = vld [vmem:[#allocation111_spill] sm:$0xff] }
 0x1ab   : > { %1619 = vmatmul.mubr.f32.gmra.mrb[40].mxu1 %v5982_v58 }
 0x1ac   : > { %1625 = vmatprep.mubr.f32.mxu1 %v5983_v33 }
 0x1ad   : > { %2796 = vmatmul.mubr.f32.gmra.mrb[40].mxu0 %v4726_v37  ;;  %v5988_v37 = vld [vmem:[#allocation114_spill] sm:$0xff] }
 0x1ae   : > { %2801 = vmatprep.mubr.f32.mxu0 %v4743_v28  ;;  %v5989_v28 = vld [vmem:[#allocation115_spill] sm:$0xff] }
 0x1af   : > { %1628 = vmatmul.mubr.f32.gmra.mrb[42].mxu1 %v5984_v0 }
 0x1b0   : > { %1634 = vmatprep.mubr.f32.mxu1 %v5985_v22 }
 0x1b1   : > { %2803 = vmatmul.mubr.f32.gmra.mrb[42].mxu0 %v5926_v15  ;;  %v5997_v15 = vld [vmem:[#allocation130_spill] sm:$0xff] }
 0x1b2   : > { %2808 = vmatprep.mubr.f32.mxu0 %v5927_v40  ;;  %v5998_v40 = vld [vmem:[#allocation132_spill] sm:$0xff] }
 0x1b3   : > { %1637 = vmatmul.mubr.f32.gmra.mrb[44].mxu1 %v5986_v49 }
 0x1b4   : > { %1643 = vmatprep.mubr.f32.mxu1 %v5987_v41 }
 0x1b5   : > { %2810 = vmatmul.mubr.f32.gmra.mrb[44].mxu0 %v5928_v19  ;;  %v5999_v19 = vld [vmem:[#allocation134_spill] sm:$0xff] }
 0x1b6   : > { %2815 = vmatprep.mubr.f32.mxu0 %v5929_v43  ;;  %v6001_v43 = vld [vmem:[#allocation136_spill] sm:$0xff] }
 0x1b7   : > { %1646 = vmatmul.mubr.f32.gmra.mrb[46].mxu1 %v5988_v37 }
 0x1b8   : > { %1652 = vmatprep.mubr.f32.mxu1 %v5989_v28 }
 0x1b9   : > { %2817 = vmatmul.mubr.f32.gmra.mrb[46].mxu0 %v4798_v62  ;;  %v5994_v62 = vld [vmem:[#allocation125_spill] sm:$0xff] }
 0x1ba   : > { %2822 = vmatprep.mubr.f32.mxu0 %v5930_v14  ;;  %v6003_v14 = vld [vmem:[#allocation138_spill] sm:$0xff] }
 0x1bb   : > { %1655 = vmatmul.mubr.f32.gmra.mrb[48].mxu1 %v5990_v50 }
 0x1bc   : > { %1661 = vmatprep.mubr.f32.mxu1 %v5991_v53 }
 0x1bd   : > { %2824 = vmatmul.mubr.f32.gmra.mrb[48].mxu0 %v5931_v54  ;;  %v6005_v54 = vld [vmem:[#allocation140_spill] sm:$0xff] }
 0x1be   : > { %2829 = vmatprep.mubr.f32.mxu0 %v5932_v60  ;;  %v6007_v60 = vld [vmem:[#allocation142_spill] sm:$0xff] }
 0x1bf   : > { %1664 = vmatmul.mubr.f32.gmra.mrb[50].mxu1 %v5992_v35 }
 0x1c0   : > { %1670 = vmatprep.mubr.f32.mxu1 %v5993_v34 }
 0x1c1   : > { %2831 = vmatmul.mubr.f32.gmra.mrb[50].mxu0 %v5933_v3  ;;  %v6008_v3 = vld [vmem:[#allocation139_spill] sm:$0xff] }
 0x1c2   : > { %2836 = vmatprep.mubr.f32.mxu0 %v5934_v52  ;;  %v6010_v52 = vld [vmem:[#allocation141_spill] sm:$0xff] }
 0x1c3   : > { %1673 = vmatmul.mubr.f32.gmra.mrb[52].mxu1 %v5994_v62 }
 0x1c4   : > { %1679 = vmatprep.mubr.f32.mxu1 %v5995_v30 }
 0x1c5   : > { %2838 = vmatmul.mubr.f32.gmra.mrb[52].mxu0 %v4849_v10  ;;  %v6000_v10 = vld [vmem:[#allocation131_spill] sm:$0xff] }
 0x1c6   : > { %2843 = vmatprep.mubr.f32.mxu0 %v5935_v56  ;;  %v6002_v56 = vld [vmem:[#allocation133_spill] sm:$0xff] }
 0x1c7   : > { %1682 = vmatmul.mubr.f32.gmra.mrb[54].mxu1 %v5996_v5 }
 0x1c8   : > { %1688 = vmatprep.mubr.f32.mxu1 %v5997_v15 }
 0x1c9   : > { %2845 = vmatmul.mubr.f32.gmra.mrb[54].mxu0 %v5936_v63  ;;  %v6004_v63 = vld [vmem:[#allocation135_spill] sm:$0xff] }
 0x1ca   : > { %2850 = vmatprep.mubr.f32.mxu0 %v5937_v51  ;;  %v6006_v51 = vld [vmem:[#allocation137_spill] sm:$0xff] }
 0x1cb   : > { %1691 = vmatmul.mubr.f32.gmra.mrb[56].mxu1 %v5998_v40 }
 0x1cc   : > { %1697 = vmatprep.mubr.f32.mxu1 %v5999_v19 }
 0x1cd   : > { %2852 = vmatmul.mubr.f32.gmra.mrb[56].mxu0 %v5938_v12  ;;  %v6009_v12 = vld [vmem:[#allocation143_spill] sm:$0xff] }
 0x1ce   : > { %2857 = vmatprep.mubr.f32.mxu0 %v6000_v10 }
 0x1cf   : > { %1700 = vmatmul.mubr.f32.gmra.mrb[58].mxu1 %v6001_v43 }
 0x1d0   : > { %1706 = vmatprep.mubr.f32.mxu1 %v6003_v14 }
 0x1d1   : > { %2859 = vmatmul.mubr.f32.gmra.mrb[58].mxu0 %v6002_v56 }
 0x1d2   : > { %2864 = vmatprep.mubr.f32.mxu0 %v6004_v63 }
 0x1d3   : > { %1709 = vmatmul.mubr.f32.gmra.mrb[60].mxu1 %v6005_v54 }
 0x1d4   : > { %1715 = vmatprep.mubr.f32.mxu1 %v6007_v60 }
 0x1d5   : > { %2866 = vmatmul.mubr.f32.gmra.mrb[60].mxu0 %v6006_v51 }
 0x1d6   : > { %2871 = vmatprep.mubr.f32.mxu0 %v6008_v3 }
 0x1d7   : > { %1718 = vmatmul.mubr.f32.gmra.mrb[62].mxu1 %v6009_v12 }
 0x1d9   : > { %2873 = vmatmul.mubr.f32.gmra.mrb[62].mxu0 %v6010_v52 }
 0x22e   : > { %v1440_v27 = vpop.f32.mrb[0].mxu1 }
 0x22f   : > { %v3268_v26 = vadd.f32 %v5301_v18, %v1440_v27  ;;  %v1442_v32 = vpop.f32.mrb[1].mxu1 }
 0x230   : > { %v2657_v57 = vpop.f32.mrb[0].mxu0 }
 0x231   : > { %v2659_v9 = vpop.f32.mrb[1].mxu0  ;;  %v3269_v4 = vadd.f32 %v3268_v26, %v2657_v57 }
 0x232   : > { %v1449_v16 = vpop.f32.mrb[2].mxu1 }
 0x233   : > { %2878 = vst [vmem:[%s5308_s11] sm:$0xff] %v3269_v4  ;;  %v3270_v45 = vadd.f32 %v5301_v18, %v1449_v16  ;;  %v1451_v31 = vpop.f32.mrb[3].mxu1 }
 0x234   : > { %v2664_v59 = vpop.f32.mrb[2].mxu0 }
 0x235   : > { %v2666_v46 = vpop.f32.mrb[3].mxu0  ;;  %v3271_v11 = vadd.f32 %v3270_v45, %v2664_v59 }
 0x236   : > { %v1458_v38 = vpop.f32.mrb[4].mxu1 }
 0x237   : > { %2879 = vst [vmem:[%s5308_s11 + $0x8] sm:$0xff] %v3271_v11  ;;  %v3272_v17 = vadd.f32 %v5301_v18, %v1458_v38  ;;  %v1460_v23 = vpop.f32.mrb[5].mxu1 }
 0x238   : > { %v2671_v1 = vpop.f32.mrb[4].mxu0 }
 0x239   : > { %v2673_v29 = vpop.f32.mrb[5].mxu0  ;;  %v3273_v2 = vadd.f32 %v3272_v17, %v2671_v1 }
 0x23a   : > { %v1467_v6 = vpop.f32.mrb[6].mxu1 }
 0x23b   : > { %2880 = vst [vmem:[%s5308_s11 + $0x10] sm:$0xff] %v3273_v2  ;;  %v3274_v20 = vadd.f32 %v5301_v18, %v1467_v6  ;;  %v1469_v21 = vpop.f32.mrb[7].mxu1 }
 0x23c   : > { %v2678_v7 = vpop.f32.mrb[6].mxu0 }
 0x23d   : > { %v2680_v24 = vpop.f32.mrb[7].mxu0  ;;  %v3275_v25 = vadd.f32 %v3274_v20, %v2678_v7 }
 0x23e   : > { %v1476_v61 = vpop.f32.mrb[8].mxu1 }
 0x23f   : > { %2881 = vst [vmem:[%s5308_s11 + $0x18] sm:$0xff] %v3275_v25  ;;  %v3276_v36 = vadd.f32 %v5301_v18, %v1476_v61  ;;  %v1478_v8 = vpop.f32.mrb[9].mxu1 }
 0x240   : > { %v2685_v48 = vpop.f32.mrb[8].mxu0 }
 0x241   : > { %v2687_v42 = vpop.f32.mrb[9].mxu0  ;;  %v3277_v13 = vadd.f32 %v3276_v36, %v2685_v48 }
 0x242   : > { %v1485_v47 = vpop.f32.mrb[10].mxu1 }
 0x243   : > { %2882 = vst [vmem:[%s5308_s11 + $0x20] sm:$0xff] %v3277_v13  ;;  %v3278_v55 = vadd.f32 %v5301_v18, %v1485_v47  ;;  %v1487_v44 = vpop.f32.mrb[11].mxu1 }
 0x244   : > { %v2692_v39 = vpop.f32.mrb[10].mxu0 }
 0x245   : > { %v2694_v58 = vpop.f32.mrb[11].mxu0  ;;  %v3279_v33 = vadd.f32 %v3278_v55, %v2692_v39 }
 0x246   : > { %v1494_v0 = vpop.f32.mrb[12].mxu1 }
 0x247   : > { %2883 = vst [vmem:[%s5308_s11 + $0x28] sm:$0xff] %v3279_v33  ;;  %v3280_v49 = vadd.f32 %v5301_v18, %v1494_v0  ;;  %v1496_v41 = vpop.f32.mrb[13].mxu1 }
 0x248   : > { %v2699_v22 = vpop.f32.mrb[12].mxu0 }
 0x249   : > { %v2701_v37 = vpop.f32.mrb[13].mxu0  ;;  %v3281_v28 = vadd.f32 %v3280_v49, %v2699_v22 }
 0x24a   : > { %v1503_v50 = vpop.f32.mrb[14].mxu1 }
 0x24b   : > { %2884 = vst [vmem:[%s5308_s11 + $0x30] sm:$0xff] %v3281_v28  ;;  %v3282_v35 = vadd.f32 %v5301_v18, %v1503_v50  ;;  %v1505_v34 = vpop.f32.mrb[15].mxu1 }
 0x24c   : > { %v2706_v53 = vpop.f32.mrb[14].mxu0 }
 0x24d   : > { %v2708_v62 = vpop.f32.mrb[15].mxu0  ;;  %v3283_v30 = vadd.f32 %v3282_v35, %v2706_v53 }
 0x24e   : > { %v1512_v5 = vpop.f32.mrb[16].mxu1 }
 0x24f   : > { %2885 = vst [vmem:[%s5308_s11 + $0x38] sm:$0xff] %v3283_v30  ;;  %v3284_v40 = vadd.f32 %v5301_v18, %v1512_v5  ;;  %v1514_v19 = vpop.f32.mrb[17].mxu1 }
 0x250   : > { %v2713_v15 = vpop.f32.mrb[16].mxu0 }
 0x251   : > { %v2715_v10 = vpop.f32.mrb[17].mxu0  ;;  %v3285_v43 = vadd.f32 %v3284_v40, %v2713_v15 }
 0x252   : > { %v1521_v56 = vpop.f32.mrb[18].mxu1 }
 0x253   : > { %2886 = vst [vmem:[%s5308_s11 + $0x40] sm:$0xff] %v3285_v43  ;;  %v3286_v63 = vadd.f32 %v5301_v18, %v1521_v56  ;;  %v1523_v54 = vpop.f32.mrb[19].mxu1 }
 0x254   : > { %v2720_v14 = vpop.f32.mrb[18].mxu0 }
 0x255   : > { %v2722_v51 = vpop.f32.mrb[19].mxu0  ;;  %v3287_v60 = vadd.f32 %v3286_v63, %v2720_v14 }
 0x256   : > { %v1530_v3 = vpop.f32.mrb[20].mxu1 }
 0x257   : > { %2887 = vst [vmem:[%s5308_s11 + $0x48] sm:$0xff] %v3287_v60  ;;  %v3288_v52 = vadd.f32 %v5301_v18, %v1530_v3  ;;  %v1532_v27 = vpop.f32.mrb[21].mxu1 }
 0x258   : > { %v2727_v12 = vpop.f32.mrb[20].mxu0 }
 0x259   : > { %v2729_v57 = vpop.f32.mrb[21].mxu0  ;;  %v3289_v26 = vadd.f32 %v3288_v52, %v2727_v12 }
 0x25a   : > { %v1539_v32 = vpop.f32.mrb[22].mxu1 }
 0x25b   : > { %2888 = vst [vmem:[%s5308_s11 + $0x50] sm:$0xff] %v3289_v26  ;;  %v3290_v4 = vadd.f32 %v5301_v18, %v1539_v32  ;;  %v1541_v16 = vpop.f32.mrb[23].mxu1 }
 0x25c   : > { %v2734_v9 = vpop.f32.mrb[22].mxu0 }
 0x25d   : > { %v2736_v59 = vpop.f32.mrb[23].mxu0  ;;  %v3291_v45 = vadd.f32 %v3290_v4, %v2734_v9 }
 0x25e   : > { %v1548_v31 = vpop.f32.mrb[24].mxu1 }
 0x25f   : > { %2889 = vst [vmem:[%s5308_s11 + $0x58] sm:$0xff] %v3291_v45  ;;  %v3292_v11 = vadd.f32 %v5301_v18, %v1548_v31  ;;  %v1550_v38 = vpop.f32.mrb[25].mxu1 }
 0x260   : > { %v2741_v46 = vpop.f32.mrb[24].mxu0 }
 0x261   : > { %v2743_v1 = vpop.f32.mrb[25].mxu0  ;;  %v3293_v17 = vadd.f32 %v3292_v11, %v2741_v46 }
 0x262   : > { %v1557_v23 = vpop.f32.mrb[26].mxu1 }
 0x263   : > { %2890 = vst [vmem:[%s5308_s11 + $0x60] sm:$0xff] %v3293_v17  ;;  %v3294_v2 = vadd.f32 %v5301_v18, %v1557_v23  ;;  %v1559_v6 = vpop.f32.mrb[27].mxu1 }
 0x264   : > { %v2748_v29 = vpop.f32.mrb[26].mxu0 }
 0x265   : > { %v2750_v7 = vpop.f32.mrb[27].mxu0  ;;  %v3295_v20 = vadd.f32 %v3294_v2, %v2748_v29 }
 0x266   : > { %v1566_v21 = vpop.f32.mrb[28].mxu1 }
 0x267   : > { %2891 = vst [vmem:[%s5308_s11 + $0x68] sm:$0xff] %v3295_v20  ;;  %v3296_v25 = vadd.f32 %v5301_v18, %v1566_v21  ;;  %v1568_v61 = vpop.f32.mrb[29].mxu1 }
 0x268   : > { %v2755_v24 = vpop.f32.mrb[28].mxu0 }
 0x269   : > { %v2757_v48 = vpop.f32.mrb[29].mxu0  ;;  %v3297_v36 = vadd.f32 %v3296_v25, %v2755_v24 }
 0x26a   : > { %v1575_v8 = vpop.f32.mrb[30].mxu1 }
 0x26b   : > { %2892 = vst [vmem:[%s5308_s11 + $0x70] sm:$0xff] %v3297_v36  ;;  %v3298_v13 = vadd.f32 %v5301_v18, %v1575_v8  ;;  %v1577_v47 = vpop.f32.mrb[31].mxu1 }
 0x26c   : > { %v2762_v42 = vpop.f32.mrb[30].mxu0 }
 0x26d   : > { %v2764_v39 = vpop.f32.mrb[31].mxu0  ;;  %v3299_v55 = vadd.f32 %v3298_v13, %v2762_v42 }
 0x26e   : > { %v1584_v44 = vpop.f32.mrb[32].mxu1 }
 0x26f   : > { %2893 = vst [vmem:[%s5308_s11 + $0x78] sm:$0xff] %v3299_v55  ;;  %v3300_v33 = vadd.f32 %v5301_v18, %v1584_v44  ;;  %v1586_v0 = vpop.f32.mrb[33].mxu1 }
 0x270   : > { %v2769_v58 = vpop.f32.mrb[32].mxu0 }
 0x271   : > { %v2771_v22 = vpop.f32.mrb[33].mxu0  ;;  %v3301_v49 = vadd.f32 %v3300_v33, %v2769_v58 }
 0x272   : > { %v1593_v41 = vpop.f32.mrb[34].mxu1 }
 0x273   : > { %2894 = vst [vmem:[%s5308_s11 + $0x80] sm:$0xff] %v3301_v49  ;;  %v3302_v28 = vadd.f32 %v5301_v18, %v1593_v41  ;;  %v1595_v50 = vpop.f32.mrb[35].mxu1 }
 0x274   : > { %v2776_v37 = vpop.f32.mrb[34].mxu0 }
 0x275   : > { %v2778_v53 = vpop.f32.mrb[35].mxu0  ;;  %v3303_v35 = vadd.f32 %v3302_v28, %v2776_v37 }
 0x276   : > { %v1602_v34 = vpop.f32.mrb[36].mxu1 }
 0x277   : > { %2895 = vst [vmem:[%s5308_s11 + $0x88] sm:$0xff] %v3303_v35  ;;  %v3304_v30 = vadd.f32 %v5301_v18, %v1602_v34  ;;  %v1604_v5 = vpop.f32.mrb[37].mxu1 }
 0x278   : > { %v2783_v62 = vpop.f32.mrb[36].mxu0 }
 0x279   : > { %v2785_v15 = vpop.f32.mrb[37].mxu0  ;;  %v3305_v40 = vadd.f32 %v3304_v30, %v2783_v62 }
 0x27a   : > { %v1611_v19 = vpop.f32.mrb[38].mxu1 }
 0x27b   : > { %2896 = vst [vmem:[%s5308_s11 + $0x90] sm:$0xff] %v3305_v40  ;;  %v3306_v43 = vadd.f32 %v5301_v18, %v1611_v19  ;;  %v1613_v56 = vpop.f32.mrb[39].mxu1 }
 0x27c   : > { %v2790_v10 = vpop.f32.mrb[38].mxu0 }
 0x27d   : > { %v2792_v14 = vpop.f32.mrb[39].mxu0  ;;  %v3307_v63 = vadd.f32 %v3306_v43, %v2790_v10 }
 0x27e   : > { %v1620_v54 = vpop.f32.mrb[40].mxu1 }
 0x27f   : > { %2897 = vst [vmem:[%s5308_s11 + $0x98] sm:$0xff] %v3307_v63  ;;  %v3308_v60 = vadd.f32 %v5301_v18, %v1620_v54  ;;  %v1622_v3 = vpop.f32.mrb[41].mxu1 }
 0x280   : > { %v2797_v51 = vpop.f32.mrb[40].mxu0 }
 0x281   : > { %v2799_v12 = vpop.f32.mrb[41].mxu0  ;;  %v3309_v52 = vadd.f32 %v3308_v60, %v2797_v51 }
 0x282   : > { %v1629_v27 = vpop.f32.mrb[42].mxu1 }
 0x283   : > { %2898 = vst [vmem:[%s5308_s11 + $0xa0] sm:$0xff] %v3309_v52  ;;  %v3310_v26 = vadd.f32 %v5301_v18, %v1629_v27  ;;  %v1631_v32 = vpop.f32.mrb[43].mxu1 }
 0x284   : > { %v2804_v57 = vpop.f32.mrb[42].mxu0 }
 0x285   : > { %v2806_v9 = vpop.f32.mrb[43].mxu0  ;;  %v3311_v4 = vadd.f32 %v3310_v26, %v2804_v57 }
 0x286   : > { %v1638_v16 = vpop.f32.mrb[44].mxu1 }
 0x287   : > { %2899 = vst [vmem:[%s5308_s11 + $0xa8] sm:$0xff] %v3311_v4  ;;  %v3312_v45 = vadd.f32 %v5301_v18, %v1638_v16  ;;  %v1640_v31 = vpop.f32.mrb[45].mxu1 }
 0x288   : > { %v2811_v59 = vpop.f32.mrb[44].mxu0 }
 0x289   : > { %v2813_v46 = vpop.f32.mrb[45].mxu0  ;;  %v3313_v11 = vadd.f32 %v3312_v45, %v2811_v59 }
 0x28a   : > { %v1647_v38 = vpop.f32.mrb[46].mxu1 }
 0x28b   : > { %2900 = vst [vmem:[%s5308_s11 + $0xb0] sm:$0xff] %v3313_v11  ;;  %v3314_v17 = vadd.f32 %v5301_v18, %v1647_v38  ;;  %v1649_v23 = vpop.f32.mrb[47].mxu1 }
 0x28c   : > { %v2818_v1 = vpop.f32.mrb[46].mxu0 }
 0x28d   : > { %v2820_v29 = vpop.f32.mrb[47].mxu0  ;;  %v3315_v2 = vadd.f32 %v3314_v17, %v2818_v1 }
 0x28e   : > { %v1656_v6 = vpop.f32.mrb[48].mxu1 }
 0x28f   : > { %2901 = vst [vmem:[%s5308_s11 + $0xb8] sm:$0xff] %v3315_v2  ;;  %v3316_v20 = vadd.f32 %v5301_v18, %v1656_v6  ;;  %v1658_v21 = vpop.f32.mrb[49].mxu1 }
 0x290   : > { %v2825_v7 = vpop.f32.mrb[48].mxu0 }
 0x291   : > { %v2827_v24 = vpop.f32.mrb[49].mxu0  ;;  %v3317_v25 = vadd.f32 %v3316_v20, %v2825_v7 }
 0x292   : > { %v1665_v61 = vpop.f32.mrb[50].mxu1 }
 0x293   : > { %2902 = vst [vmem:[%s5308_s11 + $0xc0] sm:$0xff] %v3317_v25  ;;  %v3318_v36 = vadd.f32 %v5301_v18, %v1665_v61  ;;  %v1667_v8 = vpop.f32.mrb[51].mxu1 }
 0x294   : > { %v2832_v48 = vpop.f32.mrb[50].mxu0 }
 0x295   : > { %v2834_v42 = vpop.f32.mrb[51].mxu0  ;;  %v3319_v13 = vadd.f32 %v3318_v36, %v2832_v48 }
 0x296   : > { %v1674_v47 = vpop.f32.mrb[52].mxu1 }
 0x297   : > { %2903 = vst [vmem:[%s5308_s11 + $0xc8] sm:$0xff] %v3319_v13  ;;  %v3320_v55 = vadd.f32 %v5301_v18, %v1674_v47  ;;  %v1676_v44 = vpop.f32.mrb[53].mxu1 }
 0x298   : > { %v2839_v39 = vpop.f32.mrb[52].mxu0 }
 0x299   : > { %v2841_v58 = vpop.f32.mrb[53].mxu0  ;;  %v3321_v33 = vadd.f32 %v3320_v55, %v2839_v39 }
 0x29a   : > { %v1683_v0 = vpop.f32.mrb[54].mxu1 }
 0x29b   : > { %2904 = vst [vmem:[%s5308_s11 + $0xd0] sm:$0xff] %v3321_v33  ;;  %v3322_v49 = vadd.f32 %v5301_v18, %v1683_v0  ;;  %v1685_v41 = vpop.f32.mrb[55].mxu1 }
 0x29c   : > { %v2846_v22 = vpop.f32.mrb[54].mxu0 }
 0x29d   : > { %v2848_v37 = vpop.f32.mrb[55].mxu0  ;;  %v3323_v28 = vadd.f32 %v3322_v49, %v2846_v22 }
 0x29e   : > { %v1692_v50 = vpop.f32.mrb[56].mxu1 }
 0x29f   : > { %2905 = vst [vmem:[%s5308_s11 + $0xd8] sm:$0xff] %v3323_v28  ;;  %v3324_v35 = vadd.f32 %v5301_v18, %v1692_v50  ;;  %v1694_v34 = vpop.f32.mrb[57].mxu1 }
 0x2a0   : > { %v2853_v53 = vpop.f32.mrb[56].mxu0 }
 0x2a1   : > { %v2855_v62 = vpop.f32.mrb[57].mxu0  ;;  %v3325_v30 = vadd.f32 %v3324_v35, %v2853_v53 }
 0x2a2   : > { %v1701_v5 = vpop.f32.mrb[58].mxu1 }
 0x2a3   : > { %2906 = vst [vmem:[%s5308_s11 + $0xe0] sm:$0xff] %v3325_v30  ;;  %v3326_v40 = vadd.f32 %v5301_v18, %v1701_v5  ;;  %v1703_v19 = vpop.f32.mrb[59].mxu1 }
 0x2a4   : > { %v2860_v15 = vpop.f32.mrb[58].mxu0 }
 0x2a5   : > { %v2862_v10 = vpop.f32.mrb[59].mxu0  ;;  %v3327_v43 = vadd.f32 %v3326_v40, %v2860_v15 }
 0x2a6   : > { %v1710_v56 = vpop.f32.mrb[60].mxu1 }
 0x2a7   : > { %2907 = vst [vmem:[%s5308_s11 + $0xe8] sm:$0xff] %v3327_v43  ;;  %v3328_v63 = vadd.f32 %v5301_v18, %v1710_v56  ;;  %v1712_v54 = vpop.f32.mrb[61].mxu1 }
 0x2a8   : > { %v2867_v14 = vpop.f32.mrb[60].mxu0 }
 0x2a9   : > { %v2869_v51 = vpop.f32.mrb[61].mxu0  ;;  %v3329_v60 = vadd.f32 %v3328_v63, %v2867_v14 }
 0x2aa   : > { %v1719_v3 = vpop.f32.mrb[62].mxu1 }
 0x2ab   : > { %2908 = vst [vmem:[%s5308_s11 + $0xf0] sm:$0xff] %v3329_v60  ;;  %v3330_v52 = vadd.f32 %v5301_v18, %v1719_v3  ;;  %v1721_v27 = vpop.f32.mrb[63].mxu1 }
 0x2ac   : > { %v2874_v12 = vpop.f32.mrb[62].mxu0 }
 0x2ad   : > { %v2876_v57 = vpop.f32.mrb[63].mxu0  ;;  %v3331_v26 = vadd.f32 %v3330_v52, %v2874_v12 }
 0x2af   : > { %2909 = vst [vmem:[%s5308_s11 + $0xf8] sm:$0xff] %v3331_v26 }
 0x2b0 PF: > { %s13_s12 = sadd.s32 1, %s3603_s12  }
 0x2b1   : > { %p10_p4 = scmp.ge.s32.totalorder %s13_s12, 4  }
 0x2b3   :  { %12 = sbr.rel (!%p10_p4) target bundleno = 1 (0x1), region = 62 }

</bundles_post_ra>
